<compile_context>
chip_gen: v7x
topology: tpu7x:2x2x1
jax: 0.10.0
libtpu: 0.0.40
codegen_flags: <defaults>
</compile_context>

<pallas_src>
import functools
import math

import jax
import jax.numpy as jnp
from jax.experimental import pallas as pl
from jax.experimental.pallas import tpu as pltpu

# ----------------------- synthetic model config -----------------------
EMBED_DIM = 32          # "embed_dim" of CLP_clinical (768 in the original, scaled down)
NUM_LAYERS = 2
NUM_HEADS = 2
HEAD_DIM = EMBED_DIM // NUM_HEADS
FFN_DIM = 4 * EMBED_DIM
VOCAB = 64
MAX_POS = 32
LN_EPS = 1e-12          # BERT default layer-norm eps


# --------------------------- in-kernel helpers -------------------------
def _gelu_exact(x):
    # torch nn.GELU default = exact erf GELU
    return 0.5 * x * (1.0 + jax.lax.erf(x * (1.0 / math.sqrt(2.0))))


def _layernorm(x, g, b):
    mean = jnp.mean(x, axis=-1, keepdims=True)
    xc = x - mean
    var = jnp.mean(xc * xc, axis=-1, keepdims=True)
    return xc * jax.lax.rsqrt(var + LN_EPS) * g + b


# ------------------------------ kernel ---------------------------------
def _fused_forward_kernel(
    h_ref, mask_ref,                       # (R,D) activations, (R,R) additive mask
    wqkv_ref, bqkv_ref, wo_ref,            # per-head attention weights (Q pre-scaled)
    wff1_ref, bff1_ref, wff2_ref,          # FFN
    vecl_ref, vecg_ref, wg_ref,            # packed per-layer / global vectors, global mats
    o_ref,
    *, num_layers, num_heads, bt, seq):
    """One grid step = Bt examples; whole BERT + mlp_embed stays in VMEM/vregs."""
    x = h_ref[...].astype(jnp.float32)          # (R, D),  R = bt * seq
    mask = mask_ref[...]                        # (R, R) block-diag + key-padding additive mask

    # embedding LayerNorm
    x = _layernorm(x, vecg_ref[0:1, :], vecg_ref[1:2, :])

    for l in range(num_layers):                 # unrolled (L = 2)
        xb = x.astype(jnp.bfloat16)
        attn = None
        for h in range(num_heads):              # unrolled (H = 2)
            q = (jnp.dot(xb, wqkv_ref[l, 0, h], preferred_element_type=jnp.float32)
                 + bqkv_ref[l, 0, h:h + 1, :])                                   # (R, hd)
            k = (jnp.dot(xb, wqkv_ref[l, 1, h], preferred_element_type=jnp.float32)
                 + bqkv_ref[l, 1, h:h + 1, :])
            v = (jnp.dot(xb, wqkv_ref[l, 2, h], preferred_element_type=jnp.float32)
                 + bqkv_ref[l, 2, h:h + 1, :])
            # scores for all Bt examples at once; block-diag mask kills cross-example pairs
            s = jax.lax.dot_general(q, k, (((1,), (1,)), ((), ())),
                                    preferred_element_type=jnp.float32) + mask   # (R, R)
            m = jnp.max(s, axis=-1, keepdims=True)
            p = jnp.exp(s - m)
            p = p * pl.reciprocal(jnp.sum(p, axis=-1, keepdims=True), approx=True)
            ctx = jnp.dot(p, v, preferred_element_type=jnp.float32)              # (R, hd)
            part = jnp.dot(ctx.astype(jnp.bfloat16), wo_ref[l, h],
                           preferred_element_type=jnp.float32)                   # (R, D)
            attn = part if attn is None else attn + part                         # no concat
        attn = attn + vecl_ref[l, 0:1, :]                                        # bo
        x = _layernorm(x + attn, vecl_ref[l, 1:2, :], vecl_ref[l, 2:3, :])       # LN1

        ff = (jnp.dot(x.astype(jnp.bfloat16), wff1_ref[l],
                      preferred_element_type=jnp.float32) + bff1_ref[l:l + 1, :])
        ff = _gelu_exact(ff)
        ff = (jnp.dot(ff.astype(jnp.bfloat16), wff2_ref[l],
                      preferred_element_type=jnp.float32) + vecl_ref[l, 3:4, :])
        x = _layernorm(x + ff, vecl_ref[l, 4:5, :], vecl_ref[l, 5:6, :])         # LN2

    # BERT pooler + mlp_embed, batched over all Bt CLS rows of this tile.
    cls = jnp.concatenate([x[e * seq:e * seq + 1, :] for e in range(bt)], axis=0)  # (Bt, D)
    pooled = jnp.tanh(jnp.dot(cls.astype(jnp.bfloat16), wg_ref[0],
                              preferred_element_type=jnp.float32) + vecg_ref[2:3, :])
    hmid = (jnp.dot(pooled.astype(jnp.bfloat16), wg_ref[1],
                    preferred_element_type=jnp.float32) + vecg_ref[3:4, :])
    hmid = _gelu_exact(hmid)
    out = (jnp.dot(hmid.astype(jnp.bfloat16), wg_ref[2],
                   preferred_element_type=jnp.float32) + vecg_ref[4:5, :])
    o_ref[0] = out.astype(o_ref.dtype)                                           # (Bt, D)


def _const_spec(shape):
    """Whole-array block, grid-invariant (weights resident in VMEM)."""
    zeros = (0,) * len(shape)
    return pl.BlockSpec(shape, lambda g, _z=zeros: _z)


# --------------------------- parameters --------------------------------
def init_params(key):
    # TODO(synk): pretrained HuggingFace BERT weights are replaced by deterministic
    # synthetic values (same op structure); no checkpoint is loaded.
    keys = iter(jax.random.split(key, 128))

    def nrm(shape, std=0.02):
        return (std * jax.random.normal(next(keys), shape)).astype(jnp.float32)

    p = {
        "word_emb": nrm((VOCAB, EMBED_DIM)),
        "pos_emb": nrm((MAX_POS, EMBED_DIM)),
        "tok_type_emb": nrm((2, EMBED_DIM)),
        "emb_ln_g": jnp.ones((EMBED_DIM,), jnp.float32),
        "emb_ln_b": jnp.zeros((EMBED_DIM,), jnp.float32),
        "layers": [],
        "pooler_w": nrm((EMBED_DIM, EMBED_DIM)),
        "pooler_b": jnp.zeros((EMBED_DIM,), jnp.float32),
        # mlp_embed: nn.init.normal_(weight, std=embed_dim ** -0.5)
        "mlp_w1": nrm((EMBED_DIM, EMBED_DIM), std=EMBED_DIM ** (-0.5)),
        "mlp_b1": jnp.zeros((EMBED_DIM,), jnp.float32),
        "mlp_w2": nrm((EMBED_DIM, EMBED_DIM), std=EMBED_DIM ** (-0.5)),
        "mlp_b2": jnp.zeros((EMBED_DIM,), jnp.float32),
        # nn.Parameter(torch.ones([]) * np.log(1/0.07))  (unused in forward)
        "logit_scale": jnp.asarray(math.log(1.0 / 0.07), jnp.float32),
    }
    for _ in range(NUM_LAYERS):
        p["layers"].append({
            "wq": nrm((EMBED_DIM, EMBED_DIM)), "bq": jnp.zeros((EMBED_DIM,), jnp.float32),
            "wk": nrm((EMBED_DIM, EMBED_DIM)), "bk": jnp.zeros((EMBED_DIM,), jnp.float32),
            "wv": nrm((EMBED_DIM, EMBED_DIM)), "bv": jnp.zeros((EMBED_DIM,), jnp.float32),
            "wo": nrm((EMBED_DIM, EMBED_DIM)), "bo": jnp.zeros((EMBED_DIM,), jnp.float32),
            "ln1_g": jnp.ones((EMBED_DIM,), jnp.float32),
            "ln1_b": jnp.zeros((EMBED_DIM,), jnp.float32),
            "w_ffn1": nrm((EMBED_DIM, FFN_DIM)), "b_ffn1": jnp.zeros((FFN_DIM,), jnp.float32),
            "w_ffn2": nrm((FFN_DIM, EMBED_DIM)), "b_ffn2": jnp.zeros((EMBED_DIM,), jnp.float32),
            "ln2_g": jnp.ones((EMBED_DIM,), jnp.float32),
            "ln2_b": jnp.zeros((EMBED_DIM,), jnp.float32),
        })
    return p


def _stack(params, name):
    return jnp.stack([lp[name] for lp in params["layers"]], axis=0)


# ----------------------------- forward ---------------------------------
@jax.jit
def clp_clinical_forward(params, input_ids, attention_mask):
    """Equivalent of CLP_clinical.forward({'input_ids','attention_mask'}) -> encode_out (B, D)."""
    B, S = input_ids.shape
    D, H, HD, F, L = EMBED_DIM, NUM_HEADS, HEAD_DIM, FFN_DIM, NUM_LAYERS
    scale = 1.0 / math.sqrt(HD)

    # Grid-step sizing: 2 steps keep both v7x TensorCores busy; Bt examples per step
    # fill sublanes and amortize per-step overhead.  (S is assumed a multiple of 8.)
    num_steps = 2 if B >= 2 else 1
    Bt = (B + num_steps - 1) // num_steps
    Bp = num_steps * Bt
    R = Bt * S

    # --- embeddings (gather is glue; everything else runs in the fused kernel) ---
    h = (params["word_emb"][input_ids]
         + params["pos_emb"][:S][None, :, :]
         + params["tok_type_emb"][0][None, None, :]).astype(jnp.float32)     # (B, S, D)
    am = attention_mask.astype(jnp.float32)                                   # (B, S)
    if Bp > B:   # pad batch to a whole number of per-step tiles (padded rows are discarded)
        h = jnp.concatenate([h, jnp.zeros((Bp - B, S, D), h.dtype)], axis=0)
        am = jnp.concatenate([am, jnp.ones((Bp - B, S), am.dtype)], axis=0)
    h2 = h.reshape(Bp * S, D)                                                 # (G*R, D)

    # Block-diagonal additive mask per grid step: query of example e attends only
    # non-padding keys of example e.  Shape (G*R, R).
    km = am.reshape(num_steps, Bt, S)
    eye = jnp.eye(Bt, dtype=jnp.float32)
    allowed = eye[None, :, None, :, None] * km[:, None, None, :, :]           # (G,Bt,1,Bt,S)
    allowed = jnp.broadcast_to(allowed, (num_steps, Bt, S, Bt, S))
    mask2 = ((1.0 - allowed) * -1e9).reshape(num_steps * R, R)

    # --- pack weights: per-head slabs, 1/sqrt(hd) folded into W_q/b_q, matrices in bf16 ---
    def to_heads(w):            # (L, D, D) -> (L, H, D, hd): split OUTPUT columns per head
        return w.reshape(L, D, H, HD).transpose(0, 2, 1, 3)

    wq = _stack(params, "wq") * scale
    bq = _stack(params, "bq") * scale
    wqkv = jnp.stack([to_heads(wq),
                      to_heads(_stack(params, "wk")),
                      to_heads(_stack(params, "wv"))], axis=1).astype(jnp.bfloat16)  # (L,3,H,D,hd)
    bqkv = jnp.stack([bq.reshape(L, H, HD),
                      _stack(params, "bk").reshape(L, H, HD),
                      _stack(params, "bv").reshape(L, H, HD)], axis=1)                # (L,3,H,hd)
    wo = _stack(params, "wo").reshape(L, H, HD, D).astype(jnp.bfloat16)               # (L,H,hd,D)
    wff1 = _stack(params, "w_ffn1").astype(jnp.bfloat16)                              # (L,D,F)
    bff1 = _stack(params, "b_ffn1")                                                   # (L,F)
    wff2 = _stack(params, "w_ffn2").astype(jnp.bfloat16)                              # (L,F,D)
    vecl = jnp.stack([_stack(params, "bo"), _stack(params, "ln1_g"),
                      _stack(params, "ln1_b"), _stack(params, "b_ffn2"),
                      _stack(params, "ln2_g"), _stack(params, "ln2_b")], axis=1)      # (L,6,D)
    vecg = jnp.stack([params["emb_ln_g"], params["emb_ln_b"], params["pooler_b"],
                      params["mlp_b1"], params["mlp_b2"]], axis=0)                    # (5,D)
    wg = jnp.stack([params["pooler_w"], params["mlp_w1"],
                    params["mlp_w2"]], axis=0).astype(jnp.bfloat16)                   # (3,D,D)

    out3 = pl.pallas_call(
        functools.partial(_fused_forward_kernel,
                          num_layers=L, num_heads=H, bt=Bt, seq=S),
        out_shape=jax.ShapeDtypeStruct((num_steps, Bt, D), jnp.float32),
        grid=(num_steps,),
        in_specs=[
            pl.BlockSpec((R, D), lambda g: (g, 0)),      # activation tile (Bt examples)
            pl.BlockSpec((R, R), lambda g: (g, 0)),      # block-diag additive mask
            _const_spec(wqkv.shape), _const_spec(bqkv.shape), _const_spec(wo.shape),
            _const_spec(wff1.shape), _const_spec(bff1.shape), _const_spec(wff2.shape),
            _const_spec(vecl.shape), _const_spec(vecg.shape), _const_spec(wg.shape),
        ],
        out_specs=pl.BlockSpec((1, Bt, D), lambda g: (g, 0, 0)),
        compiler_params=pltpu.CompilerParams(
            dimension_semantics=("parallel",)),          # shards batch steps across v7x TCs
    )(h2, mask2, wqkv, bqkv, wo, wff1, bff1, wff2, vecl, vecg, wg)

    return out3.reshape(Bp, D)[:B]


# ------------------------------- main -----------------------------------
if __name__ == "__main__":
    key = jax.random.PRNGKey(0)
    pkey, ikey = jax.random.split(key)
    params = init_params(pkey)

    B, S = 4, 8
    input_ids = jax.random.randint(ikey, (B, S), 0, VOCAB, dtype=jnp.int32)
    attention_mask = jnp.array([[1, 1, 1, 1, 1, 1, 1, 1],
                                [1, 1, 1, 1, 1, 1, 0, 0],
                                [1, 1, 1, 1, 1, 1, 1, 1],
                                [1, 1, 1, 0, 0, 0, 0, 0]], dtype=jnp.int32)

    out = clp_clinical_forward(params, input_ids, attention_mask)
    out = jax.block_until_ready(out)
    assert out.shape == (B, EMBED_DIM) and out.dtype == jnp.float32
    print("KERNEL_OK")
</pallas_src>

<mosaic_0001>
module attributes {stable_mosaic.version = 11 : i64} {
  func.func @_fused_forward_kernel(%arg0: i32, %arg1: memref<16x32xf32, #tpu.memory_space<vmem>>, %arg2: memref<16x16xf32, #tpu.memory_space<vmem>>, %arg3: memref<2x3x2x32x16xbf16, #tpu.memory_space<vmem>>, %arg4: memref<2x3x2x16xf32, #tpu.memory_space<vmem>>, %arg5: memref<2x2x16x32xbf16, #tpu.memory_space<vmem>>, %arg6: memref<2x32x128xbf16, #tpu.memory_space<vmem>>, %arg7: memref<2x128xf32, #tpu.memory_space<vmem>>, %arg8: memref<2x128x32xbf16, #tpu.memory_space<vmem>>, %arg9: memref<2x6x32xf32, #tpu.memory_space<vmem>>, %arg10: memref<5x32xf32, #tpu.memory_space<vmem>>, %arg11: memref<3x32x32xbf16, #tpu.memory_space<vmem>>, %arg12: memref<1x2x32xf32, #tpu.memory_space<vmem>>) attributes {dimension_semantics = [#tpu.dimension_semantics<parallel>], iteration_bounds = array<i64: 2>, scalar_prefetch = 0 : i64, scratch_operands = 0 : i64, tpu.core_type = #tpu.core_type<tc>, window_params = [{transform_indices = @transform_0, window_bounds = array<i64: 16, 32>}, {transform_indices = @transform_1, window_bounds = array<i64: 16, 16>}, {pipeline_mode = #tpu.pipeline_mode<synchronous>, transform_indices = @transform_2, window_bounds = array<i64: 2, 3, 2, 32, 16>}, {pipeline_mode = #tpu.pipeline_mode<synchronous>, transform_indices = @transform_3, window_bounds = array<i64: 2, 3, 2, 16>}, {pipeline_mode = #tpu.pipeline_mode<synchronous>, transform_indices = @transform_4, window_bounds = array<i64: 2, 2, 16, 32>}, {pipeline_mode = #tpu.pipeline_mode<synchronous>, transform_indices = @transform_5, window_bounds = array<i64: 2, 32, 128>}, {pipeline_mode = #tpu.pipeline_mode<synchronous>, transform_indices = @transform_6, window_bounds = array<i64: 2, 128>}, {pipeline_mode = #tpu.pipeline_mode<synchronous>, transform_indices = @transform_7, window_bounds = array<i64: 2, 128, 32>}, {pipeline_mode = #tpu.pipeline_mode<synchronous>, transform_indices = @transform_8, window_bounds = array<i64: 2, 6, 32>}, {pipeline_mode = #tpu.pipeline_mode<synchronous>, transform_indices = @transform_9, window_bounds = array<i64: 5, 32>}, {pipeline_mode = #tpu.pipeline_mode<synchronous>, transform_indices = @transform_10, window_bounds = array<i64: 3, 32, 32>}, {transform_indices = @transform_11, window_bounds = array<i64: 1, 2, 32>}]} {
    %c0 = arith.constant 0 : index
    %c0_0 = arith.constant 0 : index
    %0 = vector.load %arg1[%c0, %c0_0] : memref<16x32xf32, #tpu.memory_space<vmem>>, vector<16x32xf32>
    %c0_1 = arith.constant 0 : index
    %c0_2 = arith.constant 0 : index
    %1 = vector.load %arg2[%c0_1, %c0_2] : memref<16x16xf32, #tpu.memory_space<vmem>>, vector<16x16xf32>
    %c0_3 = arith.constant 0 : index
    %c0_4 = arith.constant 0 : index
    %2 = vector.load %arg10[%c0_3, %c0_4] : memref<5x32xf32, #tpu.memory_space<vmem>>, vector<1x32xf32>
    %c1 = arith.constant 1 : index
    %c0_5 = arith.constant 0 : index
    %3 = vector.load %arg10[%c1, %c0_5] : memref<5x32xf32, #tpu.memory_space<vmem>>, vector<1x32xf32>
    %cst = arith.constant dense<0.000000e+00> : vector<16xf32>
    %4 = vector.multi_reduction <add>, %0, %cst [1] : vector<16x32xf32> to vector<16xf32>
    %5 = vector.shape_cast %4 : vector<16xf32> to vector<16x1xf32>
    %cst_6 = arith.constant 3.200000e+01 : f32
    %6 = vector.broadcast %cst_6 : f32 to vector<16x1xf32>
    %7 = arith.divf %5, %6 : vector<16x1xf32>
    %8 = vector.broadcast %7 : vector<16x1xf32> to vector<16x32xf32>
    %9 = arith.subf %0, %8 : vector<16x32xf32>
    %10 = arith.mulf %9, %9 : vector<16x32xf32>
    %cst_7 = arith.constant dense<0.000000e+00> : vector<16xf32>
    %11 = vector.multi_reduction <add>, %10, %cst_7 [1] : vector<16x32xf32> to vector<16xf32>
    %12 = vector.shape_cast %11 : vector<16xf32> to vector<16x1xf32>
    %cst_8 = arith.constant 3.200000e+01 : f32
    %13 = vector.broadcast %cst_8 : f32 to vector<16x1xf32>
    %14 = arith.divf %12, %13 : vector<16x1xf32>
    %cst_9 = arith.constant 9.99999996E-13 : f32
    %15 = vector.broadcast %cst_9 : f32 to vector<16x1xf32>
    %16 = arith.addf %14, %15 : vector<16x1xf32>
    %17 = math.rsqrt %16 : vector<16x1xf32>
    %18 = vector.broadcast %17 : vector<16x1xf32> to vector<16x32xf32>
    %19 = arith.mulf %9, %18 : vector<16x32xf32>
    %20 = vector.broadcast %2 : vector<1x32xf32> to vector<16x32xf32>
    %21 = arith.mulf %19, %20 : vector<16x32xf32>
    %22 = vector.broadcast %3 : vector<1x32xf32> to vector<16x32xf32>
    %23 = arith.addf %21, %22 : vector<16x32xf32>
    %24 = arith.truncf %23 : vector<16x32xf32> to vector<16x32xbf16>
    %c0_10 = arith.constant 0 : index
    %c0_11 = arith.constant 0 : index
    %c0_12 = arith.constant 0 : index
    %c0_13 = arith.constant 0 : index
    %c0_14 = arith.constant 0 : index
    %25 = vector.load %arg3[%c0_10, %c0_11, %c0_12, %c0_13, %c0_14] : memref<2x3x2x32x16xbf16, #tpu.memory_space<vmem>>, vector<1x1x1x32x16xbf16>
    %26 = vector.shape_cast %25 : vector<1x1x1x32x16xbf16> to vector<32x16xbf16>
    %cst_15 = arith.constant dense<0.000000e+00> : vector<16x16xf32>
    %27 = tpu.matmul %24, %26, %cst_15 {dimension_numbers = #tpu.dot_dimension_numbers<[1], [0], [0], [1], [0, 0, 1, 1], [], []>} : vector<16x32xbf16>, vector<32x16xbf16>, vector<16x16xf32> -> vector<16x16xf32>
    %c0_16 = arith.constant 0 : index
    %c0_17 = arith.constant 0 : index
    %c0_18 = arith.constant 0 : index
    %c0_19 = arith.constant 0 : index
    %28 = vector.load %arg4[%c0_16, %c0_17, %c0_18, %c0_19] : memref<2x3x2x16xf32, #tpu.memory_space<vmem>>, vector<1x1x1x16xf32>
    %29 = vector.shape_cast %28 : vector<1x1x1x16xf32> to vector<1x16xf32>
    %30 = vector.broadcast %29 : vector<1x16xf32> to vector<16x16xf32>
    %31 = arith.addf %27, %30 : vector<16x16xf32>
    %c0_20 = arith.constant 0 : index
    %c1_21 = arith.constant 1 : index
    %c0_22 = arith.constant 0 : index
    %c0_23 = arith.constant 0 : index
    %c0_24 = arith.constant 0 : index
    %32 = vector.load %arg3[%c0_20, %c1_21, %c0_22, %c0_23, %c0_24] : memref<2x3x2x32x16xbf16, #tpu.memory_space<vmem>>, vector<1x1x1x32x16xbf16>
    %33 = vector.shape_cast %32 : vector<1x1x1x32x16xbf16> to vector<32x16xbf16>
    %cst_25 = arith.constant dense<0.000000e+00> : vector<16x16xf32>
    %34 = tpu.matmul %24, %33, %cst_25 {dimension_numbers = #tpu.dot_dimension_numbers<[1], [0], [0], [1], [0, 0, 1, 1], [], []>} : vector<16x32xbf16>, vector<32x16xbf16>, vector<16x16xf32> -> vector<16x16xf32>
    %c0_26 = arith.constant 0 : index
    %c1_27 = arith.constant 1 : index
    %c0_28 = arith.constant 0 : index
    %c0_29 = arith.constant 0 : index
    %35 = vector.load %arg4[%c0_26, %c1_27, %c0_28, %c0_29] : memref<2x3x2x16xf32, #tpu.memory_space<vmem>>, vector<1x1x1x16xf32>
    %36 = vector.shape_cast %35 : vector<1x1x1x16xf32> to vector<1x16xf32>
    %37 = vector.broadcast %36 : vector<1x16xf32> to vector<16x16xf32>
    %38 = arith.addf %34, %37 : vector<16x16xf32>
    %c0_30 = arith.constant 0 : index
    %c2 = arith.constant 2 : index
    %c0_31 = arith.constant 0 : index
    %c0_32 = arith.constant 0 : index
    %c0_33 = arith.constant 0 : index
    %39 = vector.load %arg3[%c0_30, %c2, %c0_31, %c0_32, %c0_33] : memref<2x3x2x32x16xbf16, #tpu.memory_space<vmem>>, vector<1x1x1x32x16xbf16>
    %40 = vector.shape_cast %39 : vector<1x1x1x32x16xbf16> to vector<32x16xbf16>
    %cst_34 = arith.constant dense<0.000000e+00> : vector<16x16xf32>
    %41 = tpu.matmul %24, %40, %cst_34 {dimension_numbers = #tpu.dot_dimension_numbers<[1], [0], [0], [1], [0, 0, 1, 1], [], []>} : vector<16x32xbf16>, vector<32x16xbf16>, vector<16x16xf32> -> vector<16x16xf32>
    %c0_35 = arith.constant 0 : index
    %c2_36 = arith.constant 2 : index
    %c0_37 = arith.constant 0 : index
    %c0_38 = arith.constant 0 : index
    %42 = vector.load %arg4[%c0_35, %c2_36, %c0_37, %c0_38] : memref<2x3x2x16xf32, #tpu.memory_space<vmem>>, vector<1x1x1x16xf32>
    %43 = vector.shape_cast %42 : vector<1x1x1x16xf32> to vector<1x16xf32>
    %44 = vector.broadcast %43 : vector<1x16xf32> to vector<16x16xf32>
    %45 = arith.addf %41, %44 : vector<16x16xf32>
    %cst_39 = arith.constant dense<0.000000e+00> : vector<16x16xf32>
    %46 = tpu.matmul %31, %38, %cst_39 {dimension_numbers = #tpu.dot_dimension_numbers<[1], [1], [0], [0], [0, 0, 1, 0], [], []>} : vector<16x16xf32>, vector<16x16xf32>, vector<16x16xf32> -> vector<16x16xf32>
    %47 = arith.addf %46, %1 : vector<16x16xf32>
    %cst_40 = arith.constant dense<0xFF800000> : vector<16xf32>
    %48 = vector.multi_reduction <maximumf>, %47, %cst_40 [1] : vector<16x16xf32> to vector<16xf32>
    %49 = vector.shape_cast %48 : vector<16xf32> to vector<16x1xf32>
    %50 = vector.broadcast %49 : vector<16x1xf32> to vector<16x16xf32>
    %51 = arith.subf %47, %50 : vector<16x16xf32>
    %52 = math.exp %51 : vector<16x16xf32>
    %cst_41 = arith.constant dense<0.000000e+00> : vector<16xf32>
    %53 = vector.multi_reduction <add>, %52, %cst_41 [1] : vector<16x16xf32> to vector<16xf32>
    %54 = vector.shape_cast %53 : vector<16xf32> to vector<16x1xf32>
    %55 = tpu.reciprocal %54 {approx = true} : vector<16x1xf32> -> vector<16x1xf32>
    %56 = vector.broadcast %55 : vector<16x1xf32> to vector<16x16xf32>
    %57 = arith.mulf %52, %56 : vector<16x16xf32>
    %cst_42 = arith.constant dense<0.000000e+00> : vector<16x16xf32>
    %58 = tpu.matmul %57, %45, %cst_42 {dimension_numbers = #tpu.dot_dimension_numbers<[1], [0], [0], [1], [0, 0, 1, 1], [], []>} : vector<16x16xf32>, vector<16x16xf32>, vector<16x16xf32> -> vector<16x16xf32>
    %59 = arith.truncf %58 : vector<16x16xf32> to vector<16x16xbf16>
    %c0_43 = arith.constant 0 : index
    %c0_44 = arith.constant 0 : index
    %c0_45 = arith.constant 0 : index
    %c0_46 = arith.constant 0 : index
    %60 = vector.load %arg5[%c0_43, %c0_44, %c0_45, %c0_46] : memref<2x2x16x32xbf16, #tpu.memory_space<vmem>>, vector<1x1x16x32xbf16>
    %61 = vector.shape_cast %60 : vector<1x1x16x32xbf16> to vector<16x32xbf16>
    %cst_47 = arith.constant dense<0.000000e+00> : vector<16x32xf32>
    %62 = tpu.matmul %59, %61, %cst_47 {dimension_numbers = #tpu.dot_dimension_numbers<[1], [0], [0], [1], [0, 0, 1, 1], [], []>} : vector<16x16xbf16>, vector<16x32xbf16>, vector<16x32xf32> -> vector<16x32xf32>
    %c0_48 = arith.constant 0 : index
    %c0_49 = arith.constant 0 : index
    %c1_50 = arith.constant 1 : index
    %c0_51 = arith.constant 0 : index
    %c0_52 = arith.constant 0 : index
    %63 = vector.load %arg3[%c0_48, %c0_49, %c1_50, %c0_51, %c0_52] : memref<2x3x2x32x16xbf16, #tpu.memory_space<vmem>>, vector<1x1x1x32x16xbf16>
    %64 = vector.shape_cast %63 : vector<1x1x1x32x16xbf16> to vector<32x16xbf16>
    %cst_53 = arith.constant dense<0.000000e+00> : vector<16x16xf32>
    %65 = tpu.matmul %24, %64, %cst_53 {dimension_numbers = #tpu.dot_dimension_numbers<[1], [0], [0], [1], [0, 0, 1, 1], [], []>} : vector<16x32xbf16>, vector<32x16xbf16>, vector<16x16xf32> -> vector<16x16xf32>
    %c0_54 = arith.constant 0 : index
    %c0_55 = arith.constant 0 : index
    %c1_56 = arith.constant 1 : index
    %c0_57 = arith.constant 0 : index
    %66 = vector.load %arg4[%c0_54, %c0_55, %c1_56, %c0_57] : memref<2x3x2x16xf32, #tpu.memory_space<vmem>>, vector<1x1x1x16xf32>
    %67 = vector.shape_cast %66 : vector<1x1x1x16xf32> to vector<1x16xf32>
    %68 = vector.broadcast %67 : vector<1x16xf32> to vector<16x16xf32>
    %69 = arith.addf %65, %68 : vector<16x16xf32>
    %c0_58 = arith.constant 0 : index
    %c1_59 = arith.constant 1 : index
    %c1_60 = arith.constant 1 : index
    %c0_61 = arith.constant 0 : index
    %c0_62 = arith.constant 0 : index
    %70 = vector.load %arg3[%c0_58, %c1_59, %c1_60, %c0_61, %c0_62] : memref<2x3x2x32x16xbf16, #tpu.memory_space<vmem>>, vector<1x1x1x32x16xbf16>
    %71 = vector.shape_cast %70 : vector<1x1x1x32x16xbf16> to vector<32x16xbf16>
    %cst_63 = arith.constant dense<0.000000e+00> : vector<16x16xf32>
    %72 = tpu.matmul %24, %71, %cst_63 {dimension_numbers = #tpu.dot_dimension_numbers<[1], [0], [0], [1], [0, 0, 1, 1], [], []>} : vector<16x32xbf16>, vector<32x16xbf16>, vector<16x16xf32> -> vector<16x16xf32>
    %c0_64 = arith.constant 0 : index
    %c1_65 = arith.constant 1 : index
    %c1_66 = arith.constant 1 : index
    %c0_67 = arith.constant 0 : index
    %73 = vector.load %arg4[%c0_64, %c1_65, %c1_66, %c0_67] : memref<2x3x2x16xf32, #tpu.memory_space<vmem>>, vector<1x1x1x16xf32>
    %74 = vector.shape_cast %73 : vector<1x1x1x16xf32> to vector<1x16xf32>
    %75 = vector.broadcast %74 : vector<1x16xf32> to vector<16x16xf32>
    %76 = arith.addf %72, %75 : vector<16x16xf32>
    %c0_68 = arith.constant 0 : index
    %c2_69 = arith.constant 2 : index
    %c1_70 = arith.constant 1 : index
    %c0_71 = arith.constant 0 : index
    %c0_72 = arith.constant 0 : index
    %77 = vector.load %arg3[%c0_68, %c2_69, %c1_70, %c0_71, %c0_72] : memref<2x3x2x32x16xbf16, #tpu.memory_space<vmem>>, vector<1x1x1x32x16xbf16>
    %78 = vector.shape_cast %77 : vector<1x1x1x32x16xbf16> to vector<32x16xbf16>
    %cst_73 = arith.constant dense<0.000000e+00> : vector<16x16xf32>
    %79 = tpu.matmul %24, %78, %cst_73 {dimension_numbers = #tpu.dot_dimension_numbers<[1], [0], [0], [1], [0, 0, 1, 1], [], []>} : vector<16x32xbf16>, vector<32x16xbf16>, vector<16x16xf32> -> vector<16x16xf32>
    %c0_74 = arith.constant 0 : index
    %c2_75 = arith.constant 2 : index
    %c1_76 = arith.constant 1 : index
    %c0_77 = arith.constant 0 : index
    %80 = vector.load %arg4[%c0_74, %c2_75, %c1_76, %c0_77] : memref<2x3x2x16xf32, #tpu.memory_space<vmem>>, vector<1x1x1x16xf32>
    %81 = vector.shape_cast %80 : vector<1x1x1x16xf32> to vector<1x16xf32>
    %82 = vector.broadcast %81 : vector<1x16xf32> to vector<16x16xf32>
    %83 = arith.addf %79, %82 : vector<16x16xf32>
    %cst_78 = arith.constant dense<0.000000e+00> : vector<16x16xf32>
    %84 = tpu.matmul %69, %76, %cst_78 {dimension_numbers = #tpu.dot_dimension_numbers<[1], [1], [0], [0], [0, 0, 1, 0], [], []>} : vector<16x16xf32>, vector<16x16xf32>, vector<16x16xf32> -> vector<16x16xf32>
    %85 = arith.addf %84, %1 : vector<16x16xf32>
    %cst_79 = arith.constant dense<0xFF800000> : vector<16xf32>
    %86 = vector.multi_reduction <maximumf>, %85, %cst_79 [1] : vector<16x16xf32> to vector<16xf32>
    %87 = vector.shape_cast %86 : vector<16xf32> to vector<16x1xf32>
    %88 = vector.broadcast %87 : vector<16x1xf32> to vector<16x16xf32>
    %89 = arith.subf %85, %88 : vector<16x16xf32>
    %90 = math.exp %89 : vector<16x16xf32>
    %cst_80 = arith.constant dense<0.000000e+00> : vector<16xf32>
    %91 = vector.multi_reduction <add>, %90, %cst_80 [1] : vector<16x16xf32> to vector<16xf32>
    %92 = vector.shape_cast %91 : vector<16xf32> to vector<16x1xf32>
    %93 = tpu.reciprocal %92 {approx = true} : vector<16x1xf32> -> vector<16x1xf32>
    %94 = vector.broadcast %93 : vector<16x1xf32> to vector<16x16xf32>
    %95 = arith.mulf %90, %94 : vector<16x16xf32>
    %cst_81 = arith.constant dense<0.000000e+00> : vector<16x16xf32>
    %96 = tpu.matmul %95, %83, %cst_81 {dimension_numbers = #tpu.dot_dimension_numbers<[1], [0], [0], [1], [0, 0, 1, 1], [], []>} : vector<16x16xf32>, vector<16x16xf32>, vector<16x16xf32> -> vector<16x16xf32>
    %97 = arith.truncf %96 : vector<16x16xf32> to vector<16x16xbf16>
    %c0_82 = arith.constant 0 : index
    %c1_83 = arith.constant 1 : index
    %c0_84 = arith.constant 0 : index
    %c0_85 = arith.constant 0 : index
    %98 = vector.load %arg5[%c0_82, %c1_83, %c0_84, %c0_85] : memref<2x2x16x32xbf16, #tpu.memory_space<vmem>>, vector<1x1x16x32xbf16>
    %99 = vector.shape_cast %98 : vector<1x1x16x32xbf16> to vector<16x32xbf16>
    %cst_86 = arith.constant dense<0.000000e+00> : vector<16x32xf32>
    %100 = tpu.matmul %97, %99, %cst_86 {dimension_numbers = #tpu.dot_dimension_numbers<[1], [0], [0], [1], [0, 0, 1, 1], [], []>} : vector<16x16xbf16>, vector<16x32xbf16>, vector<16x32xf32> -> vector<16x32xf32>
    %101 = arith.addf %62, %100 : vector<16x32xf32>
    %c0_87 = arith.constant 0 : index
    %c0_88 = arith.constant 0 : index
    %c0_89 = arith.constant 0 : index
    %102 = vector.load %arg9[%c0_87, %c0_88, %c0_89] : memref<2x6x32xf32, #tpu.memory_space<vmem>>, vector<1x1x32xf32>
    %103 = vector.shape_cast %102 : vector<1x1x32xf32> to vector<1x32xf32>
    %104 = vector.broadcast %103 : vector<1x32xf32> to vector<16x32xf32>
    %105 = arith.addf %101, %104 : vector<16x32xf32>
    %106 = arith.addf %23, %105 : vector<16x32xf32>
    %c0_90 = arith.constant 0 : index
    %c1_91 = arith.constant 1 : index
    %c0_92 = arith.constant 0 : index
    %107 = vector.load %arg9[%c0_90, %c1_91, %c0_92] : memref<2x6x32xf32, #tpu.memory_space<vmem>>, vector<1x1x32xf32>
    %108 = vector.shape_cast %107 : vector<1x1x32xf32> to vector<1x32xf32>
    %c0_93 = arith.constant 0 : index
    %c2_94 = arith.constant 2 : index
    %c0_95 = arith.constant 0 : index
    %109 = vector.load %arg9[%c0_93, %c2_94, %c0_95] : memref<2x6x32xf32, #tpu.memory_space<vmem>>, vector<1x1x32xf32>
    %110 = vector.shape_cast %109 : vector<1x1x32xf32> to vector<1x32xf32>
    %cst_96 = arith.constant dense<0.000000e+00> : vector<16xf32>
    %111 = vector.multi_reduction <add>, %106, %cst_96 [1] : vector<16x32xf32> to vector<16xf32>
    %112 = vector.shape_cast %111 : vector<16xf32> to vector<16x1xf32>
    %cst_97 = arith.constant 3.200000e+01 : f32
    %113 = vector.broadcast %cst_97 : f32 to vector<16x1xf32>
    %114 = arith.divf %112, %113 : vector<16x1xf32>
    %115 = vector.broadcast %114 : vector<16x1xf32> to vector<16x32xf32>
    %116 = arith.subf %106, %115 : vector<16x32xf32>
    %117 = arith.mulf %116, %116 : vector<16x32xf32>
    %cst_98 = arith.constant dense<0.000000e+00> : vector<16xf32>
    %118 = vector.multi_reduction <add>, %117, %cst_98 [1] : vector<16x32xf32> to vector<16xf32>
    %119 = vector.shape_cast %118 : vector<16xf32> to vector<16x1xf32>
    %cst_99 = arith.constant 3.200000e+01 : f32
    %120 = vector.broadcast %cst_99 : f32 to vector<16x1xf32>
    %121 = arith.divf %119, %120 : vector<16x1xf32>
    %cst_100 = arith.constant 9.99999996E-13 : f32
    %122 = vector.broadcast %cst_100 : f32 to vector<16x1xf32>
    %123 = arith.addf %121, %122 : vector<16x1xf32>
    %124 = math.rsqrt %123 : vector<16x1xf32>
    %125 = vector.broadcast %124 : vector<16x1xf32> to vector<16x32xf32>
    %126 = arith.mulf %116, %125 : vector<16x32xf32>
    %127 = vector.broadcast %108 : vector<1x32xf32> to vector<16x32xf32>
    %128 = arith.mulf %126, %127 : vector<16x32xf32>
    %129 = vector.broadcast %110 : vector<1x32xf32> to vector<16x32xf32>
    %130 = arith.addf %128, %129 : vector<16x32xf32>
    %131 = arith.truncf %130 : vector<16x32xf32> to vector<16x32xbf16>
    %c0_101 = arith.constant 0 : index
    %c0_102 = arith.constant 0 : index
    %c0_103 = arith.constant 0 : index
    %132 = vector.load %arg6[%c0_101, %c0_102, %c0_103] : memref<2x32x128xbf16, #tpu.memory_space<vmem>>, vector<1x32x128xbf16>
    %133 = vector.shape_cast %132 : vector<1x32x128xbf16> to vector<32x128xbf16>
    %cst_104 = arith.constant dense<0.000000e+00> : vector<16x128xf32>
    %134 = tpu.matmul %131, %133, %cst_104 {dimension_numbers = #tpu.dot_dimension_numbers<[1], [0], [0], [1], [0, 0, 1, 1], [], []>} : vector<16x32xbf16>, vector<32x128xbf16>, vector<16x128xf32> -> vector<16x128xf32>
    %c0_105 = arith.constant 0 : index
    %c0_106 = arith.constant 0 : index
    %135 = vector.load %arg7[%c0_105, %c0_106] : memref<2x128xf32, #tpu.memory_space<vmem>>, vector<1x128xf32>
    %136 = vector.broadcast %135 : vector<1x128xf32> to vector<16x128xf32>
    %137 = arith.addf %134, %136 : vector<16x128xf32>
    %cst_107 = arith.constant 5.000000e-01 : f32
    %138 = vector.broadcast %cst_107 : f32 to vector<16x128xf32>
    %139 = arith.mulf %138, %137 : vector<16x128xf32>
    %cst_108 = arith.constant 0.707106769 : f32
    %140 = vector.broadcast %cst_108 : f32 to vector<16x128xf32>
    %141 = arith.mulf %137, %140 : vector<16x128xf32>
    %142 = math.erf %141 : vector<16x128xf32>
    %cst_109 = arith.constant 1.000000e+00 : f32
    %143 = vector.broadcast %cst_109 : f32 to vector<16x128xf32>
    %144 = arith.addf %143, %142 : vector<16x128xf32>
    %145 = arith.mulf %139, %144 : vector<16x128xf32>
    %146 = arith.truncf %145 : vector<16x128xf32> to vector<16x128xbf16>
    %c0_110 = arith.constant 0 : index
    %c0_111 = arith.constant 0 : index
    %c0_112 = arith.constant 0 : index
    %147 = vector.load %arg8[%c0_110, %c0_111, %c0_112] : memref<2x128x32xbf16, #tpu.memory_space<vmem>>, vector<1x128x32xbf16>
    %148 = vector.shape_cast %147 : vector<1x128x32xbf16> to vector<128x32xbf16>
    %cst_113 = arith.constant dense<0.000000e+00> : vector<16x32xf32>
    %149 = tpu.matmul %146, %148, %cst_113 {dimension_numbers = #tpu.dot_dimension_numbers<[1], [0], [0], [1], [0, 0, 1, 1], [], []>} : vector<16x128xbf16>, vector<128x32xbf16>, vector<16x32xf32> -> vector<16x32xf32>
    %c0_114 = arith.constant 0 : index
    %c3 = arith.constant 3 : index
    %c0_115 = arith.constant 0 : index
    %150 = vector.load %arg9[%c0_114, %c3, %c0_115] : memref<2x6x32xf32, #tpu.memory_space<vmem>>, vector<1x1x32xf32>
    %151 = vector.shape_cast %150 : vector<1x1x32xf32> to vector<1x32xf32>
    %152 = vector.broadcast %151 : vector<1x32xf32> to vector<16x32xf32>
    %153 = arith.addf %149, %152 : vector<16x32xf32>
    %154 = arith.addf %130, %153 : vector<16x32xf32>
    %c0_116 = arith.constant 0 : index
    %c4 = arith.constant 4 : index
    %c0_117 = arith.constant 0 : index
    %155 = vector.load %arg9[%c0_116, %c4, %c0_117] : memref<2x6x32xf32, #tpu.memory_space<vmem>>, vector<1x1x32xf32>
    %156 = vector.shape_cast %155 : vector<1x1x32xf32> to vector<1x32xf32>
    %c0_118 = arith.constant 0 : index
    %c5 = arith.constant 5 : index
    %c0_119 = arith.constant 0 : index
    %157 = vector.load %arg9[%c0_118, %c5, %c0_119] : memref<2x6x32xf32, #tpu.memory_space<vmem>>, vector<1x1x32xf32>
    %158 = vector.shape_cast %157 : vector<1x1x32xf32> to vector<1x32xf32>
    %cst_120 = arith.constant dense<0.000000e+00> : vector<16xf32>
    %159 = vector.multi_reduction <add>, %154, %cst_120 [1] : vector<16x32xf32> to vector<16xf32>
    %160 = vector.shape_cast %159 : vector<16xf32> to vector<16x1xf32>
    %cst_121 = arith.constant 3.200000e+01 : f32
    %161 = vector.broadcast %cst_121 : f32 to vector<16x1xf32>
    %162 = arith.divf %160, %161 : vector<16x1xf32>
    %163 = vector.broadcast %162 : vector<16x1xf32> to vector<16x32xf32>
    %164 = arith.subf %154, %163 : vector<16x32xf32>
    %165 = arith.mulf %164, %164 : vector<16x32xf32>
    %cst_122 = arith.constant dense<0.000000e+00> : vector<16xf32>
    %166 = vector.multi_reduction <add>, %165, %cst_122 [1] : vector<16x32xf32> to vector<16xf32>
    %167 = vector.shape_cast %166 : vector<16xf32> to vector<16x1xf32>
    %cst_123 = arith.constant 3.200000e+01 : f32
    %168 = vector.broadcast %cst_123 : f32 to vector<16x1xf32>
    %169 = arith.divf %167, %168 : vector<16x1xf32>
    %cst_124 = arith.constant 9.99999996E-13 : f32
    %170 = vector.broadcast %cst_124 : f32 to vector<16x1xf32>
    %171 = arith.addf %169, %170 : vector<16x1xf32>
    %172 = math.rsqrt %171 : vector<16x1xf32>
    %173 = vector.broadcast %172 : vector<16x1xf32> to vector<16x32xf32>
    %174 = arith.mulf %164, %173 : vector<16x32xf32>
    %175 = vector.broadcast %156 : vector<1x32xf32> to vector<16x32xf32>
    %176 = arith.mulf %174, %175 : vector<16x32xf32>
    %177 = vector.broadcast %158 : vector<1x32xf32> to vector<16x32xf32>
    %178 = arith.addf %176, %177 : vector<16x32xf32>
    %179 = arith.truncf %178 : vector<16x32xf32> to vector<16x32xbf16>
    %c1_125 = arith.constant 1 : index
    %c0_126 = arith.constant 0 : index
    %c0_127 = arith.constant 0 : index
    %c0_128 = arith.constant 0 : index
    %c0_129 = arith.constant 0 : index
    %180 = vector.load %arg3[%c1_125, %c0_126, %c0_127, %c0_128, %c0_129] : memref<2x3x2x32x16xbf16, #tpu.memory_space<vmem>>, vector<1x1x1x32x16xbf16>
    %181 = vector.shape_cast %180 : vector<1x1x1x32x16xbf16> to vector<32x16xbf16>
    %cst_130 = arith.constant dense<0.000000e+00> : vector<16x16xf32>
    %182 = tpu.matmul %179, %181, %cst_130 {dimension_numbers = #tpu.dot_dimension_numbers<[1], [0], [0], [1], [0, 0, 1, 1], [], []>} : vector<16x32xbf16>, vector<32x16xbf16>, vector<16x16xf32> -> vector<16x16xf32>
    %c1_131 = arith.constant 1 : index
    %c0_132 = arith.constant 0 : index
    %c0_133 = arith.constant 0 : index
    %c0_134 = arith.constant 0 : index
    %183 = vector.load %arg4[%c1_131, %c0_132, %c0_133, %c0_134] : memref<2x3x2x16xf32, #tpu.memory_space<vmem>>, vector<1x1x1x16xf32>
    %184 = vector.shape_cast %183 : vector<1x1x1x16xf32> to vector<1x16xf32>
    %185 = vector.broadcast %184 : vector<1x16xf32> to vector<16x16xf32>
    %186 = arith.addf %182, %185 : vector<16x16xf32>
    %c1_135 = arith.constant 1 : index
    %c1_136 = arith.constant 1 : index
    %c0_137 = arith.constant 0 : index
    %c0_138 = arith.constant 0 : index
    %c0_139 = arith.constant 0 : index
    %187 = vector.load %arg3[%c1_135, %c1_136, %c0_137, %c0_138, %c0_139] : memref<2x3x2x32x16xbf16, #tpu.memory_space<vmem>>, vector<1x1x1x32x16xbf16>
    %188 = vector.shape_cast %187 : vector<1x1x1x32x16xbf16> to vector<32x16xbf16>
    %cst_140 = arith.constant dense<0.000000e+00> : vector<16x16xf32>
    %189 = tpu.matmul %179, %188, %cst_140 {dimension_numbers = #tpu.dot_dimension_numbers<[1], [0], [0], [1], [0, 0, 1, 1], [], []>} : vector<16x32xbf16>, vector<32x16xbf16>, vector<16x16xf32> -> vector<16x16xf32>
    %c1_141 = arith.constant 1 : index
    %c1_142 = arith.constant 1 : index
    %c0_143 = arith.constant 0 : index
    %c0_144 = arith.constant 0 : index
    %190 = vector.load %arg4[%c1_141, %c1_142, %c0_143, %c0_144] : memref<2x3x2x16xf32, #tpu.memory_space<vmem>>, vector<1x1x1x16xf32>
    %191 = vector.shape_cast %190 : vector<1x1x1x16xf32> to vector<1x16xf32>
    %192 = vector.broadcast %191 : vector<1x16xf32> to vector<16x16xf32>
    %193 = arith.addf %189, %192 : vector<16x16xf32>
    %c1_145 = arith.constant 1 : index
    %c2_146 = arith.constant 2 : index
    %c0_147 = arith.constant 0 : index
    %c0_148 = arith.constant 0 : index
    %c0_149 = arith.constant 0 : index
    %194 = vector.load %arg3[%c1_145, %c2_146, %c0_147, %c0_148, %c0_149] : memref<2x3x2x32x16xbf16, #tpu.memory_space<vmem>>, vector<1x1x1x32x16xbf16>
    %195 = vector.shape_cast %194 : vector<1x1x1x32x16xbf16> to vector<32x16xbf16>
    %cst_150 = arith.constant dense<0.000000e+00> : vector<16x16xf32>
    %196 = tpu.matmul %179, %195, %cst_150 {dimension_numbers = #tpu.dot_dimension_numbers<[1], [0], [0], [1], [0, 0, 1, 1], [], []>} : vector<16x32xbf16>, vector<32x16xbf16>, vector<16x16xf32> -> vector<16x16xf32>
    %c1_151 = arith.constant 1 : index
    %c2_152 = arith.constant 2 : index
    %c0_153 = arith.constant 0 : index
    %c0_154 = arith.constant 0 : index
    %197 = vector.load %arg4[%c1_151, %c2_152, %c0_153, %c0_154] : memref<2x3x2x16xf32, #tpu.memory_space<vmem>>, vector<1x1x1x16xf32>
    %198 = vector.shape_cast %197 : vector<1x1x1x16xf32> to vector<1x16xf32>
    %199 = vector.broadcast %198 : vector<1x16xf32> to vector<16x16xf32>
    %200 = arith.addf %196, %199 : vector<16x16xf32>
    %cst_155 = arith.constant dense<0.000000e+00> : vector<16x16xf32>
    %201 = tpu.matmul %186, %193, %cst_155 {dimension_numbers = #tpu.dot_dimension_numbers<[1], [1], [0], [0], [0, 0, 1, 0], [], []>} : vector<16x16xf32>, vector<16x16xf32>, vector<16x16xf32> -> vector<16x16xf32>
    %202 = arith.addf %201, %1 : vector<16x16xf32>
    %cst_156 = arith.constant dense<0xFF800000> : vector<16xf32>
    %203 = vector.multi_reduction <maximumf>, %202, %cst_156 [1] : vector<16x16xf32> to vector<16xf32>
    %204 = vector.shape_cast %203 : vector<16xf32> to vector<16x1xf32>
    %205 = vector.broadcast %204 : vector<16x1xf32> to vector<16x16xf32>
    %206 = arith.subf %202, %205 : vector<16x16xf32>
    %207 = math.exp %206 : vector<16x16xf32>
    %cst_157 = arith.constant dense<0.000000e+00> : vector<16xf32>
    %208 = vector.multi_reduction <add>, %207, %cst_157 [1] : vector<16x16xf32> to vector<16xf32>
    %209 = vector.shape_cast %208 : vector<16xf32> to vector<16x1xf32>
    %210 = tpu.reciprocal %209 {approx = true} : vector<16x1xf32> -> vector<16x1xf32>
    %211 = vector.broadcast %210 : vector<16x1xf32> to vector<16x16xf32>
    %212 = arith.mulf %207, %211 : vector<16x16xf32>
    %cst_158 = arith.constant dense<0.000000e+00> : vector<16x16xf32>
    %213 = tpu.matmul %212, %200, %cst_158 {dimension_numbers = #tpu.dot_dimension_numbers<[1], [0], [0], [1], [0, 0, 1, 1], [], []>} : vector<16x16xf32>, vector<16x16xf32>, vector<16x16xf32> -> vector<16x16xf32>
    %214 = arith.truncf %213 : vector<16x16xf32> to vector<16x16xbf16>
    %c1_159 = arith.constant 1 : index
    %c0_160 = arith.constant 0 : index
    %c0_161 = arith.constant 0 : index
    %c0_162 = arith.constant 0 : index
    %215 = vector.load %arg5[%c1_159, %c0_160, %c0_161, %c0_162] : memref<2x2x16x32xbf16, #tpu.memory_space<vmem>>, vector<1x1x16x32xbf16>
    %216 = vector.shape_cast %215 : vector<1x1x16x32xbf16> to vector<16x32xbf16>
    %cst_163 = arith.constant dense<0.000000e+00> : vector<16x32xf32>
    %217 = tpu.matmul %214, %216, %cst_163 {dimension_numbers = #tpu.dot_dimension_numbers<[1], [0], [0], [1], [0, 0, 1, 1], [], []>} : vector<16x16xbf16>, vector<16x32xbf16>, vector<16x32xf32> -> vector<16x32xf32>
    %c1_164 = arith.constant 1 : index
    %c0_165 = arith.constant 0 : index
    %c1_166 = arith.constant 1 : index
    %c0_167 = arith.constant 0 : index
    %c0_168 = arith.constant 0 : index
    %218 = vector.load %arg3[%c1_164, %c0_165, %c1_166, %c0_167, %c0_168] : memref<2x3x2x32x16xbf16, #tpu.memory_space<vmem>>, vector<1x1x1x32x16xbf16>
    %219 = vector.shape_cast %218 : vector<1x1x1x32x16xbf16> to vector<32x16xbf16>
    %cst_169 = arith.constant dense<0.000000e+00> : vector<16x16xf32>
    %220 = tpu.matmul %179, %219, %cst_169 {dimension_numbers = #tpu.dot_dimension_numbers<[1], [0], [0], [1], [0, 0, 1, 1], [], []>} : vector<16x32xbf16>, vector<32x16xbf16>, vector<16x16xf32> -> vector<16x16xf32>
    %c1_170 = arith.constant 1 : index
    %c0_171 = arith.constant 0 : index
    %c1_172 = arith.constant 1 : index
    %c0_173 = arith.constant 0 : index
    %221 = vector.load %arg4[%c1_170, %c0_171, %c1_172, %c0_173] : memref<2x3x2x16xf32, #tpu.memory_space<vmem>>, vector<1x1x1x16xf32>
    %222 = vector.shape_cast %221 : vector<1x1x1x16xf32> to vector<1x16xf32>
    %223 = vector.broadcast %222 : vector<1x16xf32> to vector<16x16xf32>
    %224 = arith.addf %220, %223 : vector<16x16xf32>
    %c1_174 = arith.constant 1 : index
    %c1_175 = arith.constant 1 : index
    %c1_176 = arith.constant 1 : index
    %c0_177 = arith.constant 0 : index
    %c0_178 = arith.constant 0 : index
    %225 = vector.load %arg3[%c1_174, %c1_175, %c1_176, %c0_177, %c0_178] : memref<2x3x2x32x16xbf16, #tpu.memory_space<vmem>>, vector<1x1x1x32x16xbf16>
    %226 = vector.shape_cast %225 : vector<1x1x1x32x16xbf16> to vector<32x16xbf16>
    %cst_179 = arith.constant dense<0.000000e+00> : vector<16x16xf32>
    %227 = tpu.matmul %179, %226, %cst_179 {dimension_numbers = #tpu.dot_dimension_numbers<[1], [0], [0], [1], [0, 0, 1, 1], [], []>} : vector<16x32xbf16>, vector<32x16xbf16>, vector<16x16xf32> -> vector<16x16xf32>
    %c1_180 = arith.constant 1 : index
    %c1_181 = arith.constant 1 : index
    %c1_182 = arith.constant 1 : index
    %c0_183 = arith.constant 0 : index
    %228 = vector.load %arg4[%c1_180, %c1_181, %c1_182, %c0_183] : memref<2x3x2x16xf32, #tpu.memory_space<vmem>>, vector<1x1x1x16xf32>
    %229 = vector.shape_cast %228 : vector<1x1x1x16xf32> to vector<1x16xf32>
    %230 = vector.broadcast %229 : vector<1x16xf32> to vector<16x16xf32>
    %231 = arith.addf %227, %230 : vector<16x16xf32>
    %c1_184 = arith.constant 1 : index
    %c2_185 = arith.constant 2 : index
    %c1_186 = arith.constant 1 : index
    %c0_187 = arith.constant 0 : index
    %c0_188 = arith.constant 0 : index
    %232 = vector.load %arg3[%c1_184, %c2_185, %c1_186, %c0_187, %c0_188] : memref<2x3x2x32x16xbf16, #tpu.memory_space<vmem>>, vector<1x1x1x32x16xbf16>
    %233 = vector.shape_cast %232 : vector<1x1x1x32x16xbf16> to vector<32x16xbf16>
    %cst_189 = arith.constant dense<0.000000e+00> : vector<16x16xf32>
    %234 = tpu.matmul %179, %233, %cst_189 {dimension_numbers = #tpu.dot_dimension_numbers<[1], [0], [0], [1], [0, 0, 1, 1], [], []>} : vector<16x32xbf16>, vector<32x16xbf16>, vector<16x16xf32> -> vector<16x16xf32>
    %c1_190 = arith.constant 1 : index
    %c2_191 = arith.constant 2 : index
    %c1_192 = arith.constant 1 : index
    %c0_193 = arith.constant 0 : index
    %235 = vector.load %arg4[%c1_190, %c2_191, %c1_192, %c0_193] : memref<2x3x2x16xf32, #tpu.memory_space<vmem>>, vector<1x1x1x16xf32>
    %236 = vector.shape_cast %235 : vector<1x1x1x16xf32> to vector<1x16xf32>
    %237 = vector.broadcast %236 : vector<1x16xf32> to vector<16x16xf32>
    %238 = arith.addf %234, %237 : vector<16x16xf32>
    %cst_194 = arith.constant dense<0.000000e+00> : vector<16x16xf32>
    %239 = tpu.matmul %224, %231, %cst_194 {dimension_numbers = #tpu.dot_dimension_numbers<[1], [1], [0], [0], [0, 0, 1, 0], [], []>} : vector<16x16xf32>, vector<16x16xf32>, vector<16x16xf32> -> vector<16x16xf32>
    %240 = arith.addf %239, %1 : vector<16x16xf32>
    %cst_195 = arith.constant dense<0xFF800000> : vector<16xf32>
    %241 = vector.multi_reduction <maximumf>, %240, %cst_195 [1] : vector<16x16xf32> to vector<16xf32>
    %242 = vector.shape_cast %241 : vector<16xf32> to vector<16x1xf32>
    %243 = vector.broadcast %242 : vector<16x1xf32> to vector<16x16xf32>
    %244 = arith.subf %240, %243 : vector<16x16xf32>
    %245 = math.exp %244 : vector<16x16xf32>
    %cst_196 = arith.constant dense<0.000000e+00> : vector<16xf32>
    %246 = vector.multi_reduction <add>, %245, %cst_196 [1] : vector<16x16xf32> to vector<16xf32>
    %247 = vector.shape_cast %246 : vector<16xf32> to vector<16x1xf32>
    %248 = tpu.reciprocal %247 {approx = true} : vector<16x1xf32> -> vector<16x1xf32>
    %249 = vector.broadcast %248 : vector<16x1xf32> to vector<16x16xf32>
    %250 = arith.mulf %245, %249 : vector<16x16xf32>
    %cst_197 = arith.constant dense<0.000000e+00> : vector<16x16xf32>
    %251 = tpu.matmul %250, %238, %cst_197 {dimension_numbers = #tpu.dot_dimension_numbers<[1], [0], [0], [1], [0, 0, 1, 1], [], []>} : vector<16x16xf32>, vector<16x16xf32>, vector<16x16xf32> -> vector<16x16xf32>
    %252 = arith.truncf %251 : vector<16x16xf32> to vector<16x16xbf16>
    %c1_198 = arith.constant 1 : index
    %c1_199 = arith.constant 1 : index
    %c0_200 = arith.constant 0 : index
    %c0_201 = arith.constant 0 : index
    %253 = vector.load %arg5[%c1_198, %c1_199, %c0_200, %c0_201] : memref<2x2x16x32xbf16, #tpu.memory_space<vmem>>, vector<1x1x16x32xbf16>
    %254 = vector.shape_cast %253 : vector<1x1x16x32xbf16> to vector<16x32xbf16>
    %cst_202 = arith.constant dense<0.000000e+00> : vector<16x32xf32>
    %255 = tpu.matmul %252, %254, %cst_202 {dimension_numbers = #tpu.dot_dimension_numbers<[1], [0], [0], [1], [0, 0, 1, 1], [], []>} : vector<16x16xbf16>, vector<16x32xbf16>, vector<16x32xf32> -> vector<16x32xf32>
    %256 = arith.addf %217, %255 : vector<16x32xf32>
    %c1_203 = arith.constant 1 : index
    %c0_204 = arith.constant 0 : index
    %c0_205 = arith.constant 0 : index
    %257 = vector.load %arg9[%c1_203, %c0_204, %c0_205] : memref<2x6x32xf32, #tpu.memory_space<vmem>>, vector<1x1x32xf32>
    %258 = vector.shape_cast %257 : vector<1x1x32xf32> to vector<1x32xf32>
    %259 = vector.broadcast %258 : vector<1x32xf32> to vector<16x32xf32>
    %260 = arith.addf %256, %259 : vector<16x32xf32>
    %261 = arith.addf %178, %260 : vector<16x32xf32>
    %c1_206 = arith.constant 1 : index
    %c1_207 = arith.constant 1 : index
    %c0_208 = arith.constant 0 : index
    %262 = vector.load %arg9[%c1_206, %c1_207, %c0_208] : memref<2x6x32xf32, #tpu.memory_space<vmem>>, vector<1x1x32xf32>
    %263 = vector.shape_cast %262 : vector<1x1x32xf32> to vector<1x32xf32>
    %c1_209 = arith.constant 1 : index
    %c2_210 = arith.constant 2 : index
    %c0_211 = arith.constant 0 : index
    %264 = vector.load %arg9[%c1_209, %c2_210, %c0_211] : memref<2x6x32xf32, #tpu.memory_space<vmem>>, vector<1x1x32xf32>
    %265 = vector.shape_cast %264 : vector<1x1x32xf32> to vector<1x32xf32>
    %cst_212 = arith.constant dense<0.000000e+00> : vector<16xf32>
    %266 = vector.multi_reduction <add>, %261, %cst_212 [1] : vector<16x32xf32> to vector<16xf32>
    %267 = vector.shape_cast %266 : vector<16xf32> to vector<16x1xf32>
    %cst_213 = arith.constant 3.200000e+01 : f32
    %268 = vector.broadcast %cst_213 : f32 to vector<16x1xf32>
    %269 = arith.divf %267, %268 : vector<16x1xf32>
    %270 = vector.broadcast %269 : vector<16x1xf32> to vector<16x32xf32>
    %271 = arith.subf %261, %270 : vector<16x32xf32>
    %272 = arith.mulf %271, %271 : vector<16x32xf32>
    %cst_214 = arith.constant dense<0.000000e+00> : vector<16xf32>
    %273 = vector.multi_reduction <add>, %272, %cst_214 [1] : vector<16x32xf32> to vector<16xf32>
    %274 = vector.shape_cast %273 : vector<16xf32> to vector<16x1xf32>
    %cst_215 = arith.constant 3.200000e+01 : f32
    %275 = vector.broadcast %cst_215 : f32 to vector<16x1xf32>
    %276 = arith.divf %274, %275 : vector<16x1xf32>
    %cst_216 = arith.constant 9.99999996E-13 : f32
    %277 = vector.broadcast %cst_216 : f32 to vector<16x1xf32>
    %278 = arith.addf %276, %277 : vector<16x1xf32>
    %279 = math.rsqrt %278 : vector<16x1xf32>
    %280 = vector.broadcast %279 : vector<16x1xf32> to vector<16x32xf32>
    %281 = arith.mulf %271, %280 : vector<16x32xf32>
    %282 = vector.broadcast %263 : vector<1x32xf32> to vector<16x32xf32>
    %283 = arith.mulf %281, %282 : vector<16x32xf32>
    %284 = vector.broadcast %265 : vector<1x32xf32> to vector<16x32xf32>
    %285 = arith.addf %283, %284 : vector<16x32xf32>
    %286 = arith.truncf %285 : vector<16x32xf32> to vector<16x32xbf16>
    %c1_217 = arith.constant 1 : index
    %c0_218 = arith.constant 0 : index
    %c0_219 = arith.constant 0 : index
    %287 = vector.load %arg6[%c1_217, %c0_218, %c0_219] : memref<2x32x128xbf16, #tpu.memory_space<vmem>>, vector<1x32x128xbf16>
    %288 = vector.shape_cast %287 : vector<1x32x128xbf16> to vector<32x128xbf16>
    %cst_220 = arith.constant dense<0.000000e+00> : vector<16x128xf32>
    %289 = tpu.matmul %286, %288, %cst_220 {dimension_numbers = #tpu.dot_dimension_numbers<[1], [0], [0], [1], [0, 0, 1, 1], [], []>} : vector<16x32xbf16>, vector<32x128xbf16>, vector<16x128xf32> -> vector<16x128xf32>
    %c1_221 = arith.constant 1 : index
    %c0_222 = arith.constant 0 : index
    %290 = vector.load %arg7[%c1_221, %c0_222] : memref<2x128xf32, #tpu.memory_space<vmem>>, vector<1x128xf32>
    %291 = vector.broadcast %290 : vector<1x128xf32> to vector<16x128xf32>
    %292 = arith.addf %289, %291 : vector<16x128xf32>
    %cst_223 = arith.constant 5.000000e-01 : f32
    %293 = vector.broadcast %cst_223 : f32 to vector<16x128xf32>
    %294 = arith.mulf %293, %292 : vector<16x128xf32>
    %cst_224 = arith.constant 0.707106769 : f32
    %295 = vector.broadcast %cst_224 : f32 to vector<16x128xf32>
    %296 = arith.mulf %292, %295 : vector<16x128xf32>
    %297 = math.erf %296 : vector<16x128xf32>
    %cst_225 = arith.constant 1.000000e+00 : f32
    %298 = vector.broadcast %cst_225 : f32 to vector<16x128xf32>
    %299 = arith.addf %298, %297 : vector<16x128xf32>
    %300 = arith.mulf %294, %299 : vector<16x128xf32>
    %301 = arith.truncf %300 : vector<16x128xf32> to vector<16x128xbf16>
    %c1_226 = arith.constant 1 : index
    %c0_227 = arith.constant 0 : index
    %c0_228 = arith.constant 0 : index
    %302 = vector.load %arg8[%c1_226, %c0_227, %c0_228] : memref<2x128x32xbf16, #tpu.memory_space<vmem>>, vector<1x128x32xbf16>
    %303 = vector.shape_cast %302 : vector<1x128x32xbf16> to vector<128x32xbf16>
    %cst_229 = arith.constant dense<0.000000e+00> : vector<16x32xf32>
    %304 = tpu.matmul %301, %303, %cst_229 {dimension_numbers = #tpu.dot_dimension_numbers<[1], [0], [0], [1], [0, 0, 1, 1], [], []>} : vector<16x128xbf16>, vector<128x32xbf16>, vector<16x32xf32> -> vector<16x32xf32>
    %c1_230 = arith.constant 1 : index
    %c3_231 = arith.constant 3 : index
    %c0_232 = arith.constant 0 : index
    %305 = vector.load %arg9[%c1_230, %c3_231, %c0_232] : memref<2x6x32xf32, #tpu.memory_space<vmem>>, vector<1x1x32xf32>
    %306 = vector.shape_cast %305 : vector<1x1x32xf32> to vector<1x32xf32>
    %307 = vector.broadcast %306 : vector<1x32xf32> to vector<16x32xf32>
    %308 = arith.addf %304, %307 : vector<16x32xf32>
    %309 = arith.addf %285, %308 : vector<16x32xf32>
    %c1_233 = arith.constant 1 : index
    %c4_234 = arith.constant 4 : index
    %c0_235 = arith.constant 0 : index
    %310 = vector.load %arg9[%c1_233, %c4_234, %c0_235] : memref<2x6x32xf32, #tpu.memory_space<vmem>>, vector<1x1x32xf32>
    %311 = vector.shape_cast %310 : vector<1x1x32xf32> to vector<1x32xf32>
    %c1_236 = arith.constant 1 : index
    %c5_237 = arith.constant 5 : index
    %c0_238 = arith.constant 0 : index
    %312 = vector.load %arg9[%c1_236, %c5_237, %c0_238] : memref<2x6x32xf32, #tpu.memory_space<vmem>>, vector<1x1x32xf32>
    %313 = vector.shape_cast %312 : vector<1x1x32xf32> to vector<1x32xf32>
    %cst_239 = arith.constant dense<0.000000e+00> : vector<16xf32>
    %314 = vector.multi_reduction <add>, %309, %cst_239 [1] : vector<16x32xf32> to vector<16xf32>
    %315 = vector.shape_cast %314 : vector<16xf32> to vector<16x1xf32>
    %cst_240 = arith.constant 3.200000e+01 : f32
    %316 = vector.broadcast %cst_240 : f32 to vector<16x1xf32>
    %317 = arith.divf %315, %316 : vector<16x1xf32>
    %318 = vector.broadcast %317 : vector<16x1xf32> to vector<16x32xf32>
    %319 = arith.subf %309, %318 : vector<16x32xf32>
    %320 = arith.mulf %319, %319 : vector<16x32xf32>
    %cst_241 = arith.constant dense<0.000000e+00> : vector<16xf32>
    %321 = vector.multi_reduction <add>, %320, %cst_241 [1] : vector<16x32xf32> to vector<16xf32>
    %322 = vector.shape_cast %321 : vector<16xf32> to vector<16x1xf32>
    %cst_242 = arith.constant 3.200000e+01 : f32
    %323 = vector.broadcast %cst_242 : f32 to vector<16x1xf32>
    %324 = arith.divf %322, %323 : vector<16x1xf32>
    %cst_243 = arith.constant 9.99999996E-13 : f32
    %325 = vector.broadcast %cst_243 : f32 to vector<16x1xf32>
    %326 = arith.addf %324, %325 : vector<16x1xf32>
    %327 = math.rsqrt %326 : vector<16x1xf32>
    %328 = vector.broadcast %327 : vector<16x1xf32> to vector<16x32xf32>
    %329 = arith.mulf %319, %328 : vector<16x32xf32>
    %330 = vector.broadcast %311 : vector<1x32xf32> to vector<16x32xf32>
    %331 = arith.mulf %329, %330 : vector<16x32xf32>
    %332 = vector.broadcast %313 : vector<1x32xf32> to vector<16x32xf32>
    %333 = arith.addf %331, %332 : vector<16x32xf32>
    %334 = vector.extract_strided_slice %333 {offsets = [0, 0], sizes = [1, 32], strides = [1, 1]} : vector<16x32xf32> to vector<1x32xf32>
    %335 = vector.extract_strided_slice %333 {offsets = [8, 0], sizes = [1, 32], strides = [1, 1]} : vector<16x32xf32> to vector<1x32xf32>
    %336 = tpu.concatenate %334, %335 in 0 : vector<1x32xf32>, vector<1x32xf32> -> vector<2x32xf32>
    %337 = arith.truncf %336 : vector<2x32xf32> to vector<2x32xbf16>
    %c0_244 = arith.constant 0 : index
    %c0_245 = arith.constant 0 : index
    %c0_246 = arith.constant 0 : index
    %338 = vector.load %arg11[%c0_244, %c0_245, %c0_246] : memref<3x32x32xbf16, #tpu.memory_space<vmem>>, vector<1x32x32xbf16>
    %339 = vector.shape_cast %338 : vector<1x32x32xbf16> to vector<32x32xbf16>
    %cst_247 = arith.constant dense<0.000000e+00> : vector<2x32xf32>
    %340 = tpu.matmul %337, %339, %cst_247 {dimension_numbers = #tpu.dot_dimension_numbers<[1], [0], [0], [1], [0, 0, 1, 1], [], []>} : vector<2x32xbf16>, vector<32x32xbf16>, vector<2x32xf32> -> vector<2x32xf32>
    %c2_248 = arith.constant 2 : index
    %c0_249 = arith.constant 0 : index
    %341 = vector.load %arg10[%c2_248, %c0_249] : memref<5x32xf32, #tpu.memory_space<vmem>>, vector<1x32xf32>
    %342 = vector.broadcast %341 : vector<1x32xf32> to vector<2x32xf32>
    %343 = arith.addf %340, %342 : vector<2x32xf32>
    %344 = math.tanh %343 : vector<2x32xf32>
    %345 = arith.truncf %344 : vector<2x32xf32> to vector<2x32xbf16>
    %c1_250 = arith.constant 1 : index
    %c0_251 = arith.constant 0 : index
    %c0_252 = arith.constant 0 : index
    %346 = vector.load %arg11[%c1_250, %c0_251, %c0_252] : memref<3x32x32xbf16, #tpu.memory_space<vmem>>, vector<1x32x32xbf16>
    %347 = vector.shape_cast %346 : vector<1x32x32xbf16> to vector<32x32xbf16>
    %cst_253 = arith.constant dense<0.000000e+00> : vector<2x32xf32>
    %348 = tpu.matmul %345, %347, %cst_253 {dimension_numbers = #tpu.dot_dimension_numbers<[1], [0], [0], [1], [0, 0, 1, 1], [], []>} : vector<2x32xbf16>, vector<32x32xbf16>, vector<2x32xf32> -> vector<2x32xf32>
    %c3_254 = arith.constant 3 : index
    %c0_255 = arith.constant 0 : index
    %349 = vector.load %arg10[%c3_254, %c0_255] : memref<5x32xf32, #tpu.memory_space<vmem>>, vector<1x32xf32>
    %350 = vector.broadcast %349 : vector<1x32xf32> to vector<2x32xf32>
    %351 = arith.addf %348, %350 : vector<2x32xf32>
    %cst_256 = arith.constant 5.000000e-01 : f32
    %352 = vector.broadcast %cst_256 : f32 to vector<2x32xf32>
    %353 = arith.mulf %352, %351 : vector<2x32xf32>
    %cst_257 = arith.constant 0.707106769 : f32
    %354 = vector.broadcast %cst_257 : f32 to vector<2x32xf32>
    %355 = arith.mulf %351, %354 : vector<2x32xf32>
    %356 = math.erf %355 : vector<2x32xf32>
    %cst_258 = arith.constant 1.000000e+00 : f32
    %357 = vector.broadcast %cst_258 : f32 to vector<2x32xf32>
    %358 = arith.addf %357, %356 : vector<2x32xf32>
    %359 = arith.mulf %353, %358 : vector<2x32xf32>
    %360 = arith.truncf %359 : vector<2x32xf32> to vector<2x32xbf16>
    %c2_259 = arith.constant 2 : index
    %c0_260 = arith.constant 0 : index
    %c0_261 = arith.constant 0 : index
    %361 = vector.load %arg11[%c2_259, %c0_260, %c0_261] : memref<3x32x32xbf16, #tpu.memory_space<vmem>>, vector<1x32x32xbf16>
    %362 = vector.shape_cast %361 : vector<1x32x32xbf16> to vector<32x32xbf16>
    %cst_262 = arith.constant dense<0.000000e+00> : vector<2x32xf32>
    %363 = tpu.matmul %360, %362, %cst_262 {dimension_numbers = #tpu.dot_dimension_numbers<[1], [0], [0], [1], [0, 0, 1, 1], [], []>} : vector<2x32xbf16>, vector<32x32xbf16>, vector<2x32xf32> -> vector<2x32xf32>
    %c4_263 = arith.constant 4 : index
    %c0_264 = arith.constant 0 : index
    %364 = vector.load %arg10[%c4_263, %c0_264] : memref<5x32xf32, #tpu.memory_space<vmem>>, vector<1x32xf32>
    %365 = vector.broadcast %364 : vector<1x32xf32> to vector<2x32xf32>
    %366 = arith.addf %363, %365 : vector<2x32xf32>
    %c0_265 = arith.constant 0 : index
    %c0_266 = arith.constant 0 : index
    %c0_267 = arith.constant 0 : index
    %367 = vector.load %arg12[%c0_265, %c0_266, %c0_267] : memref<1x2x32xf32, #tpu.memory_space<vmem>>, vector<1x2x32xf32>
    %368 = vector.shape_cast %367 : vector<1x2x32xf32> to vector<2x32xf32>
    %369 = vector.shape_cast %366 : vector<2x32xf32> to vector<1x2x32xf32>
    tpu.vector_store %arg12[%c0_265, %c0_266, %c0_267], %369 {strides = array<i32>} : memref<1x2x32xf32, #tpu.memory_space<vmem>>, vector<1x2x32xf32>,
    return
  }
  func.func @transform_0(%arg0: i32) -> (i32, i32) {
    %c0_i32 = arith.constant 0 : i32
    %c0_i32_0 = arith.constant 0 : i32
    return %arg0, %c0_i32 : i32, i32
  }
  func.func @transform_1(%arg0: i32) -> (i32, i32) {
    %c0_i32 = arith.constant 0 : i32
    %c0_i32_0 = arith.constant 0 : i32
    return %arg0, %c0_i32 : i32, i32
  }
  func.func @transform_2(%arg0: i32) -> (i32, i32, i32, i32, i32) {
    %c0_i32 = arith.constant 0 : i32
    %c0_i32_0 = arith.constant 0 : i32
    %c0_i32_1 = arith.constant 0 : i32
    %c0_i32_2 = arith.constant 0 : i32
    %c0_i32_3 = arith.constant 0 : i32
    %c0_i32_4 = arith.constant 0 : i32
    return %c0_i32, %c0_i32_0, %c0_i32_1, %c0_i32_2, %c0_i32_3 : i32, i32, i32, i32, i32
  }
  func.func @transform_3(%arg0: i32) -> (i32, i32, i32, i32) {
    %c0_i32 = arith.constant 0 : i32
    %c0_i32_0 = arith.constant 0 : i32
    %c0_i32_1 = arith.constant 0 : i32
    %c0_i32_2 = arith.constant 0 : i32
    %c0_i32_3 = arith.constant 0 : i32
    return %c0_i32, %c0_i32_0, %c0_i32_1, %c0_i32_2 : i32, i32, i32, i32
  }
  func.func @transform_4(%arg0: i32) -> (i32, i32, i32, i32) {
    %c0_i32 = arith.constant 0 : i32
    %c0_i32_0 = arith.constant 0 : i32
    %c0_i32_1 = arith.constant 0 : i32
    %c0_i32_2 = arith.constant 0 : i32
    %c0_i32_3 = arith.constant 0 : i32
    return %c0_i32, %c0_i32_0, %c0_i32_1, %c0_i32_2 : i32, i32, i32, i32
  }
  func.func @transform_5(%arg0: i32) -> (i32, i32, i32) {
    %c0_i32 = arith.constant 0 : i32
    %c0_i32_0 = arith.constant 0 : i32
    %c0_i32_1 = arith.constant 0 : i32
    %c0_i32_2 = arith.constant 0 : i32
    return %c0_i32, %c0_i32_0, %c0_i32_1 : i32, i32, i32
  }
  func.func @transform_6(%arg0: i32) -> (i32, i32) {
    %c0_i32 = arith.constant 0 : i32
    %c0_i32_0 = arith.constant 0 : i32
    %c0_i32_1 = arith.constant 0 : i32
    return %c0_i32, %c0_i32_0 : i32, i32
  }
  func.func @transform_7(%arg0: i32) -> (i32, i32, i32) {
    %c0_i32 = arith.constant 0 : i32
    %c0_i32_0 = arith.constant 0 : i32
    %c0_i32_1 = arith.constant 0 : i32
    %c0_i32_2 = arith.constant 0 : i32
    return %c0_i32, %c0_i32_0, %c0_i32_1 : i32, i32, i32
  }
  func.func @transform_8(%arg0: i32) -> (i32, i32, i32) {
    %c0_i32 = arith.constant 0 : i32
    %c0_i32_0 = arith.constant 0 : i32
    %c0_i32_1 = arith.constant 0 : i32
    %c0_i32_2 = arith.constant 0 : i32
    return %c0_i32, %c0_i32_0, %c0_i32_1 : i32, i32, i32
  }
  func.func @transform_9(%arg0: i32) -> (i32, i32) {
    %c0_i32 = arith.constant 0 : i32
    %c0_i32_0 = arith.constant 0 : i32
    %c0_i32_1 = arith.constant 0 : i32
    return %c0_i32, %c0_i32_0 : i32, i32
  }
  func.func @transform_10(%arg0: i32) -> (i32, i32, i32) {
    %c0_i32 = arith.constant 0 : i32
    %c0_i32_0 = arith.constant 0 : i32
    %c0_i32_1 = arith.constant 0 : i32
    %c0_i32_2 = arith.constant 0 : i32
    return %c0_i32, %c0_i32_0, %c0_i32_1 : i32, i32, i32
  }
  func.func @transform_11(%arg0: i32) -> (i32, i32, i32) {
    %c0_i32 = arith.constant 0 : i32
    %c0_i32_0 = arith.constant 0 : i32
    %c0_i32_1 = arith.constant 0 : i32
    return %arg0, %c0_i32, %c0_i32_0 : i32, i32, i32
  }
}

</mosaic_0001>

<bundles_post_ra>
// kernel: clp_clinical_forward.1
= control target key start
LH: loop header
LB: loop body
LE: loop exit
PB: predicated region body
PF: predicated region fallthrough
CT: control target
= control target key end

     0   :  { %16 = vsyncpa [#allocation3], 0  ;;  %s4588_s0 = inlined_call_operand.vmem [shape: f32[32,32], index: 0, kind: input, shape index: {}]   ;;  %s4589_s1 = inlined_call_operand.vmem [shape: f32[32,16], index: 1, kind: input, shape index: {}]   ;;  %s4590_s2 = inlined_call_operand.vmem [shape: bf16[2,3,2,32,16], index: 2, kind: input, shape index: {}]   ;;  %s4591_s3 = inlined_call_operand.vmem [shape: f32[2,3,2,16], index: 3, kind: input, shape index: {}]   ;;  %s4592_s4 = inlined_call_operand.vmem [shape: bf16[2,2,16,32], index: 4, kind: input, shape index: {}]   ;;  %s4593_s5 = inlined_call_operand.vmem [shape: bf16[2,32,128], index: 5, kind: input, shape index: {}]   ;;  %s4594_s6 = inlined_call_operand.vmem [shape: f32[2,128], index: 6, kind: input, shape index: {}]   ;;  %s4595_s7 = inlined_call_operand.vmem [shape: bf16[2,128,32], index: 7, kind: input, shape index: {}]   ;;  %s4596_s8 = inlined_call_operand.vmem [shape: f32[2,6,32], index: 8, kind: input, shape index: {}]   ;;  %s4597_s9 = inlined_call_operand.vmem [shape: f32[5,32], index: 9, kind: input, shape index: {}]   ;;  %s4598_s10 = inlined_call_operand.vmem [shape: bf16[3,32,32], index: 10, kind: input, shape index: {}]   ;;  %s4599_s11 = inlined_call_operand.hbm [shape: f32[2,2,32], index: 11, kind: output, shape index: {}]  }
   0x1   :  { %18 = vsyncpa [#allocation3 + $0x1], 0  ;;  %s3982_s17 = smov 0   ;;  %s3984_s18 = smov 0  }
   0x2   :  { %s3986_s19 = smov 0   ;;  %s3988_s20 = smov 0  }
   0x3 LB: > { %s4003_s21 = sadd.s32 4294967295, %s3917_s20   ;;  %s3054_s22 = sadd.s32 4294967294, %s3917_s20   ;;  %s3917_s20 = sphi %s3988_s20, %s4607_s20   ;;  %s3913_s19 = sphi %s3986_s19, %s4606_s19   ;;  %s3909_s18 = sphi %s3984_s18, %s4605_s18   ;;  %s3905_s17 = sphi %s3982_s17, %s4604_s17  }
   0x4   : > { %s4007_s23 = sadd.s32 1, %s3917_s20   ;;  %s272_s24 = sadd.s32 1, %s3913_s19 }
   0x5   : > { %s269_s25 = ssub.s32 %s3917_s20, %s4007_s23  ;;  %p282_p0 = scmp.ne.s32.totalorder %s3913_s19, %s3909_s18 }
   0x6   : > { %p270_p1 = scmp.eq.s32.totalorder %s269_s25, 0  ;;  %p283_p2 = scmp.eq.s32.totalorder %s4003_s21, 1 }
   0x7   : > { %p288_p3 = scmp.ne.s32.totalorder %s3909_s18, %s3905_s17  ;;  %p289_p4 = scmp.eq.s32.totalorder %s3054_s22, 1 }
   0x8   : > { %s4018_s26 = scalar_select %p270_p1, %s3913_s19, %s272_s24  }
   0x9   : > { %p4020_p5 = por %p283_p2, %p282_p0  ;;  %p4024_p6 = por %p289_p4, %p288_p3 }
   0xa   : > { %p3057_p7 = scmp.ge.s32.totalorder %s3917_s20, 1  ;;  %p352_p8 = scmp.lt.s32.totalorder %s3917_s20, 3 }
   0xc   : > { %p353_p9 = pnand %p3057_p7, %p352_p8 }
   0xd   : > { %s3059_s29 = sshll.u32 (!%p353_p9), %s4003_s21, 1  ;;  %vm416_vm0 = vcmask (!%p353_p9), 261120   ;;  %v3737_v14 = vld [vmem:[%s4590_s2] sm:$0xff] (!%p353_p9)   ;;  %v3919_v16 = vmov (!%p353_p9), 0.0   ;;  %v3739_v17 = vld [vmem:[%s4590_s2 + $0x8] sm:$0xff] (!%p353_p9)   ;;  %vm3920_vm1 = vmmov (!%p353_p9), 0  }
   0xe   : > { %356 = sbr.rel (%p353_p9) target bundleno = 7119 (0x1bcf), region = 64  ;;  %p398_p10 = scmp.lt.s32.totalorder (!%p353_p9), %s3059_s29, 3  ;;  %v3738_v15 = vld [vmem:[%s4590_s2 + $0x20] sm:$0xff] (!%p353_p9)   ;;  %3400 = vmatprep.subr.bf16.mxu0 (!%p353_p9), %v3919_v16  ;;  %3408 = vmatprep.subr.bf16.mxu1 (!%p353_p9), %v3919_v16  ;;  %v3740_v18 = vld [vmem:[%s4590_s2 + $0x28] sm:$0xff] (!%p353_p9)   ;;  %v3743_v38 = vld [vmem:[%s4590_s2 + $0x10] sm:$0xff] (!%p353_p9)   ;;  %vm650_vm2 = vcmask (!%p353_p9), 130048  }
   0xf   : > { %3401 = vmatpush3.bf16.msra.mxu0 (!%p353_p9), %v3737_v14  ;;  %3409 = vmatpush3.bf16.msra.mxu1 (!%p353_p9), %v3738_v15  ;;  %v3063_v27 = vld [vmem:[%s4597_s9] ss:$0 sm:$0xff] (!%p353_p9)  ;;  %v3064_v31 = vld [vmem:[%s4597_s9 + $0x1] ss:$0 sm:$0xff] (!%p353_p9)  ;;  %v3742_v37 = vld [vmem:[%s4590_s2 + $0x48] sm:$0xff] (!%p353_p9)   ;;  %vm2762_vm4 = vcmask (!%p353_p9), 1040384  }
  0x10   : > { %3402 = vmatprep.subr.bf16.mxu0 (!%p353_p9), %v3919_v16  ;;  %3410 = vmatprep.subr.bf16.mxu1 (!%p353_p9), %v3919_v16  ;;  %v3741_v35 = vld [vmem:[%s4590_s2 + $0x40] sm:$0xff] (!%p353_p9)   ;;  %v3744_v39 = vld [vmem:[%s4590_s2 + $0x18] sm:$0xff] (!%p353_p9)   ;;  %v3745_v40 = vld [vmem:[%s4590_s2 + $0x50] sm:$0xff] (!%p353_p9)   ;;  %s3288_s24 = sshll.u32 (!%p353_p9), %s4003_s21, 5  ;;  %vm2967_vm5 = vcmask (!%p353_p9), 254976   ;;  %s3921_s16 = smov (!%p353_p9), [#allocation2]  }
  0x11   : > { %3404 = vmatprep.mubr.msk.bf16.mxu0 (!%p353_p9), %vm3920_vm1, %v3919_v16  ;;  %3412 = vmatprep.mubr.msk.bf16.mxu1 (!%p353_p9), %vm3920_vm1, %v3919_v16  ;;  %v3746_v41 = vld [vmem:[%s4590_s2 + $0x58] sm:$0xff] (!%p353_p9)   ;;  %v3065_v42 = vld [vmem:[%s4591_s3] ss:$0 sm:$0xff] (!%p353_p9)  ;;  %v3074_v44 = vld [vmem:[%s4591_s3 + $0x2] ss:$0 sm:$0xff] (!%p353_p9)  ;;  %s4546_s13 = scalar_lea.hbm (!%p353_p9), %s4599_s11, %s3288_s24  ;;  %s3859_s22 = sshll.u32 (!%p353_p9), %s3921_s16, 4  ;;  %s3860_s22 = int_to_ptr.vmem [resolvable:$false] %s3859_s22 }
  0x12   : > { %vm4126_vm3 = vmpackc.low (!%p353_p9), %vm650_vm2, %vm650_vm2  ;;  %v3083_v57 = vld [vmem:[%s4591_s3 + $0x4] ss:$0 sm:$0xff] (!%p353_p9) }
  0x13   : > { %3403 = vmatpush3.bf16.msra.mxu0 (!%p353_p9), %v3739_v17  ;;  %3411 = vmatpush3.bf16.msra.mxu1 (!%p353_p9), %v3740_v18 }
  0x14   : > { %3416 = vmatprep.subr.bf16.mxu0 (!%p353_p9), %v3919_v16 }
  0x15   : > { %s4609_s29 = smov (!%p398_p10, %s3059_s29), 3 }
  0x16   : > { %s3060_s30 = sshll.u32 %s4609_s29, 3 }
  0x17   : > { %s401_s14 = scalar_lea.vmem %s4588_s0, %s3060_s30  ;;  %s407_s25 = scalar_lea.vmem %s4589_s1, %s3060_s30 }
  0x18   : > { %v410_v0 = vld [vmem:[%s401_s14] sm:$0xff]  ;;  %v411_v1 = vld [vmem:[%s401_s14 + $0x8] sm:$0xff]  ;;  %s394_s14 = sand.u32 1, %s3909_s18   ;;  %s3861_s30 = scalar_lea.vmem %s3860_s22, 64 }
  0x19   : > { %v417_v2 = vsel %vm416_vm0, %v410_v0, 0.0  ;;  %v420_v3 = vsel %vm416_vm0, %v411_v1, 0.0  ;;  %v4153_v17 = vld [vmem:[%s407_s25 + $0x8] sm:$0xff]  ;;  %v4155_v18 = vld [vmem:[%s407_s25] sm:$0xff]  ;;  %s3058_s15 = sshll.u32 %s394_s14, 1  ;;  %s2970_s21 = scalar_lea.sflag [#allocation3], %s394_s14 }
  0x1a   : > { %418 = vadd.xlane.f32.xlu0 %v417_v2  ;;  %s396_s25 = scalar_lea.vmem [#allocation2], %s3058_s15 }
  0x1b   : > { %s2983_s29 = sshll.u32 %s396_s25, 4  ;;  %s4548_s29 = int_to_ptr.vmem [resolvable:$true] %s2983_s29 }
  0x1c   : > { %s3855_s15 = scalar_lea.vmem %s4548_s29, 32  ;;  %p3862_p0 = scmp.lt.s32.totalorder %s4548_s29, %s3860_s22 }
  0x1d   : > { %p3856_p11 = scmp.ne.s32.totalorder %s4548_s29, %s3855_s15  ;;  %p3863_p1 = scmp.lt.s32.totalorder %s3861_s30, %s3855_s15 }
  0x1e   : > { %421 = vadd.xlane.f32.xlu0 %v420_v3 }
  0x1f   : > { %p3857_p12 = pnand %p3856_p11, %p4020_p5  ;;  %p3864_p2 = por %p3863_p1, %p3862_p0 }
  0x21   : > { %p3858_p13 = pneg %p3857_p12 }
  0x23   : > { %p3865_p3 = pnand %p3864_p2, %p3858_p13 }
  0xa7   : > { %v419_v4 = vpop.xlane.xlu0 %418 }
  0xa8   : > { %v424_v5 = vmul.f32 0.03125, %v419_v4  ;;  %v3097_v4 = vld [vmem:[%s4591_s3 + $0x1] ss:$0 sm:$0xff] }
  0xaa   : > { %v426_v6 = vsub.f32 %v410_v0, %v424_v5 }
  0xab   : > { %v422_v7 = vpop.xlane.xlu0 %421 }
  0xac   : > { %v425_v8 = vmul.f32 0.03125, %v422_v7  ;;  %v428_v9 = vmul.f32 %v426_v6, %v426_v6 }
  0xae   : > { %v427_v10 = vsub.f32 %v411_v1, %v425_v8  ;;  %v430_v11 = vsel %vm416_vm0, %v428_v9, 0.0  ;;  %v3115_v8 = vld [vmem:[%s4591_s3 + $0x5] ss:$0 sm:$0xff] }
  0xaf   : > { %431 = vadd.xlane.f32.xlu1 %v430_v11 }
  0xb0   : > { %v429_v12 = vmul.f32 %v427_v10, %v427_v10 }
  0xb2   : > { %v433_v13 = vsel %vm416_vm0, %v429_v12, 0.0 }
  0xb3   : > { %434 = vadd.xlane.f32.xlu1 %v433_v13 }
 0x13c   : > { %v432_v19 = vpop.xlane.xlu1 %431 }
 0x13d   : > { %v436_v20 = vmul.f32 0.03125, %v432_v19 }
 0x13f   : > { %v438_v21 = vadd.f32 1e-12, %v436_v20 }
 0x140   : > { %v435_v22 = vpop.xlane.xlu1 %434 }
 0x141   : > { %3791 = vrsqrt.f32 %v438_v21  ;;  %v437_v23 = vmul.f32 0.03125, %v435_v22 }
 0x143   : > { %v439_v24 = vadd.f32 1e-12, %v437_v23 }
 0x145   : > { %3793 = vrsqrt.f32 %v439_v24 }
 0x14b   : > { %v3792_v25 = vpop.eup %3791 }
 0x14c   : > { %v442_v26 = vmul.f32 %v3792_v25, %v426_v6 }
 0x14e   : > { %v448_v29 = vmul.f32 %v3063_v27, %v442_v26 }
 0x14f   : > { %v3794_v28 = vpop.eup %3793 }
 0x150   : > { %v443_v30 = vmul.f32 %v3794_v28, %v427_v10  ;;  %v4070_v33 = vadd.f32 %v3064_v31, %v448_v29 }
 0x152   : > { %v449_v32 = vmul.f32 %v3063_v27, %v443_v30 }
 0x154   : > { %v4072_v34 = vadd.f32 %v3064_v31, %v449_v32 }
 0x156   : > { %v4079_v36 = vpack.c.bf16 %v4072_v34, %v4070_v33 }
 0x158   : > { %3405 = vmatmul.mubr.msk.bf16.vlgmr.msra.gmra.mrb[0].mxu0 %vm416_vm0, %v4079_v36  ;;  %3413 = vmatmul.mubr.msk.bf16.vlgmr.msra.gmra.mrb[0].mxu1 %vm416_vm0, %v4079_v36 }
 0x159   : > { %3417 = vmatpush3.bf16.msra.mxu0 %v3741_v35  ;;  %3420 = vmatprep.mubr.msk.bf16.mxu0 %vm3920_vm1, %v3919_v16 }
 0x15a   : > { %3418 = vmatprep.subr.bf16.mxu0 %v3919_v16 }
 0x15d   : > { %3419 = vmatpush3.bf16.msra.mxu0 %v3742_v37 }
 0x15e   : > { %3438 = vmatprep.subr.bf16.mxu0 %v3919_v16 }
 0x160   : > { %3421 = vmatmul.mubr.msk.bf16.vlgmr.msra.gmra.mrb[4].mxu0 %vm416_vm0, %v4079_v36 }
 0x161   : > { %3439 = vmatpush3.bf16.msra.mxu0 %v3743_v38  ;;  %3442 = vmatprep.mubr.msk.bf16.mxu0 %vm3920_vm1, %v3919_v16 }
 0x162   : > { %3440 = vmatprep.subr.bf16.mxu0 %v3919_v16 }
 0x165   : > { %3441 = vmatpush3.bf16.msra.mxu0 %v3744_v39 }
 0x166   : > { %3454 = vmatprep.subr.bf16.mxu0 %v3919_v16 }
 0x168   : > { %3443 = vmatmul.mubr.msk.bf16.vlgmr.msra.gmra.mrb[8].mxu0 %vm416_vm0, %v4079_v36 }
 0x169   : > { %3455 = vmatpush3.bf16.msra.mxu0 %v3745_v40  ;;  %3458 = vmatprep.mubr.msk.bf16.mxu0 %vm3920_vm1, %v3919_v16 }
 0x16a   : > { %3456 = vmatprep.subr.bf16.mxu0 %v3919_v16 }
 0x16d   : > { %3457 = vmatpush3.bf16.msra.mxu0 %v3746_v41 }
 0x170   : > { %3459 = vmatmul.mubr.msk.bf16.vlgmr.msra.gmra.mrb[12].mxu0 %vm416_vm0, %v4079_v36 }
 0x22b   : > { %v515_v43 = vpop.f32.mrb[0].mxu0  ;;  %v579_v45 = vpop.f32.mrb[0].mxu1 }
 0x22c   : > { %v516_v46 = vadd.f32 %v3065_v42, %v515_v43  ;;  %v3406_v47 = vpop.f32.mrb[1].mxu0  ;;  %v3414_v48 = vpop.f32.mrb[1].mxu1  ;;  %v580_v51 = vadd.f32 %v3074_v44, %v579_v45  ;;  %v3747_v43 = vld [vmem:[%s4590_s2 + $0x30] sm:$0xff]   ;;  %v3748_v45 = vld [vmem:[%s4590_s2 + $0x38] sm:$0xff]  }
 0x22d   : > { %v518_v49 = vpop.f32.mrb[2].mxu0  ;;  %v582_v50 = vpop.f32.mrb[2].mxu1 }
 0x22e   : > { %v583_v52 = vadd.f32 %v3074_v44, %v582_v50  ;;  %v3407_v53 = vpop.f32.mrb[3].mxu0  ;;  %v3415_v54 = vpop.f32.mrb[3].mxu1  ;;  %3428 = vmatprep.mubr.msk.f32.mxu1 %vm650_vm2, %v516_v46  ;;  %v519_v0 = vadd.f32 %v3065_v42, %v518_v49  ;;  %v3106_v50 = vld [vmem:[%s4591_s3 + $0x3] ss:$0 sm:$0xff] }
 0x230   : > { %v3656_v56 = vpack.c.bf16 %v583_v52, %v580_v51 }
 0x232   : > { %3658 = vmatprep.subr.msk.bf16.mxu1 %vm4126_vm3, %v3656_v56 }
 0x233   : > { %v643_v58 = vpop.f32.mrb[4].mxu0  ;;  %3661 = vmatpush3.bf16.xpose.msk.msra.mxu1 %vm4126_vm3, %v3656_v56 }
 0x234   : > { %v3422_v59 = vpop.f32.mrb[5].mxu0  ;;  %v644_v61 = vadd.f32 %v3083_v57, %v643_v58 }
 0x235   : > { %v646_v60 = vpop.f32.mrb[6].mxu0 }
 0x236   : > { %v647_v62 = vadd.f32 %v3083_v57, %v646_v60  ;;  %v3423_v63 = vpop.f32.mrb[7].mxu0 }
 0x238   : > { %v3662_v1 = vpack.c.bf16 %v647_v62, %v644_v61 }
 0x23a   : > { %3429 = vmatmul.mubr.msk.f32.vlgmr.msra.gmra.mrb[4].mxu1 %vm650_vm2, %v519_v0  ;;  %3663 = vmatprep.subr.bf16.mxu1 %v3662_v1 }
 0x23b   : > { %3665 = vmatpush3.bf16.msra.mxu1 %v3662_v1  ;;  %v900_v2 = vpop.f32.mrb[8].mxu0 }
 0x23c   : > { %v3444_v3 = vpop.f32.mrb[9].mxu0  ;;  %3446 = vmatprep.subr.bf16.mxu1 %v3919_v16  ;;  %v901_v46 = vadd.f32 %v3097_v4, %v900_v2 }
 0x23d   : > { %v903_v5 = vpop.f32.mrb[10].mxu0 }
 0x23e   : > { %v4142_v6 = vadd.f32 %v3097_v4, %v903_v5  ;;  %v3445_v7 = vpop.f32.mrb[11].mxu0 }
 0x243   : > { %v1026_v9 = vpop.f32.mrb[12].mxu0 }
 0x244   : > { %v3460_v10 = vpop.f32.mrb[13].mxu0  ;;  %v1027_v12 = vadd.f32 %v3115_v8, %v1026_v9 }
 0x245   : > { %v1029_v11 = vpop.f32.mrb[14].mxu0 }
 0x246   : > { %v1030_v13 = vadd.f32 %v3115_v8, %v1029_v11  ;;  %v3461_v14 = vpop.f32.mrb[15].mxu0 }
 0x248   : > { %v3672_v15 = vpack.c.bf16 %v1030_v13, %v1027_v12 }
 0x24a   : > { %3673 = vmatprep.subr.bf16.mxu0 %v3672_v15 }
 0x24b   : > { %3675 = vmatpush3.bf16.msra.mxu0 %v3672_v15  ;;  %v3749_v15 = vld [vmem:[%s4592_s4] sm:$0xff]  }
 0x24c   : > { %3482 = vmatprep.subr.bf16.mxu0 %v3919_v16 }
 0x30d   : > { %v3430_v19 = vpop.f32.mrb[4].mxu1 }
 0x30e   : > { %v735_v20 = vadd.f32 %v3430_v19, %v4153_v17  ;;  %v729_v21 = vpop.f32.mrb[5].mxu1 }
 0x30f   : > { %v730_v22 = vadd.f32 %v729_v21, %v4155_v18 }
 0x310   : > { %v741_v23 = vsel %vm650_vm2, %v735_v20, -inf }
 0x311   : > { %742 = vmax.xlane.f32.xlu1 %v741_v23  ;;  %v738_v24 = vsel %vm650_vm2, %v730_v22, -inf }
 0x312   : > { %739 = vmax.xlane.f32.xlu0 %v738_v24 }
 0x39e   : > { %v743_v25 = vpop.xlane.xlu1 %742 }
 0x39f   : > { %v745_v26 = vsub.f32 %v735_v20, %v743_v25  ;;  %v740_v27 = vpop.xlane.xlu0 %739  ;;  %v3750_v20 = vld [vmem:[%s4592_s4 + $0x8] sm:$0xff]  }
 0x3a0   : > { %v744_v28 = vsub.f32 %v730_v22, %v740_v27 }
 0x3a1   : > { %v748_v29 = vmul.f32 1.442695, %v745_v26 }
 0x3a2   : > { %v746_v30 = vmul.f32 1.442695, %v744_v28 }
 0x3a3   : > { %3795 = vpow2.f32 %v748_v29  ;;  %v3131_v29 = vld [vmem:[%s4596_s8] ss:$0 sm:$0xff] }
 0x3a4   : > { %3797 = vpow2.f32 %v746_v30 }
 0x3ad   : > { %v3796_v31 = vpop.eup %3795 }
 0x3ae   : > { %v3798_v32 = vpop.eup %3797  ;;  %v753_v35 = vsel %vm650_vm2, %v3796_v31, 0.0 }
 0x3af   : > { %754 = vadd.xlane.f32.xlu1 %v753_v35  ;;  %v750_v37 = vsel %vm650_vm2, %v3798_v32, 0.0 }
 0x3b0   : > { %751 = vadd.xlane.f32.xlu0 %v750_v37 }
 0x43c   : > { %v755_v38 = vpop.xlane.xlu1 %754 }
 0x43d   : > { %3799 = vrcp.f32 %v755_v38  ;;  %v752_v39 = vpop.xlane.xlu0 %751 }
 0x43e   : > { %3801 = vrcp.f32 %v752_v39 }
 0x447   : > { %v3800_v40 = vpop.eup %3799 }
 0x448   : > { %v3802_v41 = vpop.eup %3801  ;;  %v759_v44 = vmul.f32 %v3800_v40, %v3796_v31 }
 0x449   : > { %v758_v42 = vmul.f32 %v3802_v41, %v3798_v32 }
 0x44b   : > { %3435 = vmatprep.mubr.msk.f32.mxu1 %vm650_vm2, %v758_v42 }
 0x44c   : > { %3436 = vmatmul.mubr.msk.f32.vlgmr.msra.gmra.mrb[6].mxu1 %vm650_vm2, %v759_v44 }
 0x44d   : > { %3447 = vmatpush3.bf16.msra.mxu1 %v3747_v43  ;;  %3450 = vmatprep.mubr.msk.bf16.mxu1 %vm3920_vm1, %v3919_v16 }
 0x44e   : > { %3448 = vmatprep.subr.bf16.mxu1 %v3919_v16 }
 0x451   : > { %3449 = vmatpush3.bf16.msra.mxu1 %v3748_v45 }
 0x454   : > { %3451 = vmatmul.mubr.msk.bf16.vlgmr.msra.gmra.mrb[8].mxu1 %vm416_vm0, %v4079_v36 }
 0x455   : > { %3466 = vmatprep.mubr.msk.f32.mxu1 %vm650_vm2, %v901_v46 }
 0x51f   : > { %v3437_v47 = vpop.f32.mrb[6].mxu1 }
 0x520   : > { %v832_v48 = vpop.f32.mrb[7].mxu1 }
 0x521   : > { %v841_v49 = vpack.c.bf16 %v3437_v47, %v832_v48 }
 0x527   : > { %v963_v51 = vpop.f32.mrb[8].mxu1 }
 0x528   : > { %v3452_v52 = vpop.f32.mrb[9].mxu1  ;;  %v964_v54 = vadd.f32 %v3106_v50, %v963_v51 }
 0x529   : > { %v966_v53 = vpop.f32.mrb[10].mxu1 }
 0x52a   : > { %v967_v56 = vadd.f32 %v3106_v50, %v966_v53  ;;  %v3453_v57 = vpop.f32.mrb[11].mxu1  ;;  %v3752_v53 = vld [vmem:[%s4593_s5 + $0x8] sm:$0xff]  }
 0x52c   : > { %v3666_v58 = vpack.c.bf16 %v967_v56, %v964_v54  ;;  %v3753_v54 = vld [vmem:[%s4595_s7] sm:$0xff]   ;;  %v3754_v56 = vld [vmem:[%s4595_s7 + $0x8] sm:$0xff]  }
 0x52e   : > { %3668 = vmatprep.subr.msk.bf16.mxu1 %vm4126_vm3, %v3666_v58 }
 0x52f   : > { %3671 = vmatpush3.bf16.xpose.msk.msra.mxu1 %vm4126_vm3, %v3666_v58 }
 0x530   : > { %3476 = vmatprep.subr.bf16.mxu1 %v3919_v16 }
 0x536   : > { %3467 = vmatmul.mubr.msk.f32.vlgmr.msra.gmra.mrb[12].mxu1 %vm650_vm2, %v4142_v6 }
 0x537   : > { %3478 = vmatprep.mubr.msk.bf16.mxu1 %vm3920_vm1, %v3919_v16  ;;  %3477 = vmatpush3.bf16.msra.mxu1 %v3750_v20 }
 0x538   : > { %3488 = vmatprep.subr.bf16.mxu1 %v3919_v16 }
 0x609   : > { %v3468_v36 = vpop.f32.mrb[12].mxu1 }
 0x60a   : > { %v1117_v59 = vadd.f32 %v3468_v36, %v4153_v17  ;;  %v1111_v60 = vpop.f32.mrb[13].mxu1 }
 0x60b   : > { %v1112_v61 = vadd.f32 %v1111_v60, %v4155_v18 }
 0x60c   : > { %v1123_v62 = vsel %vm650_vm2, %v1117_v59, -inf }
 0x60d   : > { %1124 = vmax.xlane.f32.xlu1 %v1123_v62  ;;  %v1120_v63 = vsel %vm650_vm2, %v1112_v61, -inf }
 0x60e   : > { %1121 = vmax.xlane.f32.xlu0 %v1120_v63  ;;  %v3132_v63 = vld [vmem:[%s4596_s8 + $0x1] ss:$0 sm:$0xff] }
 0x69a   : > { %v1125_v0 = vpop.xlane.xlu1 %1124 }
 0x69b   : > { %v1127_v1 = vsub.f32 %v1117_v59, %v1125_v0  ;;  %v1122_v2 = vpop.xlane.xlu0 %1121 }
 0x69c   : > { %v1126_v3 = vsub.f32 %v1112_v61, %v1122_v2 }
 0x69d   : > { %v1130_v4 = vmul.f32 1.442695, %v1127_v1 }
 0x69e   : > { %v1128_v5 = vmul.f32 1.442695, %v1126_v3 }
 0x69f   : > { %3803 = vpow2.f32 %v1130_v4  ;;  %v3133_v4 = vld [vmem:[%s4596_s8 + $0x2] ss:$0 sm:$0xff] }
 0x6a0   : > { %3805 = vpow2.f32 %v1128_v5 }
 0x6a9   : > { %v3804_v6 = vpop.eup %3803 }
 0x6aa   : > { %v3806_v7 = vpop.eup %3805  ;;  %v1135_v8 = vsel %vm650_vm2, %v3804_v6, 0.0 }
 0x6ab   : > { %1136 = vadd.xlane.f32.xlu1 %v1135_v8  ;;  %v1132_v9 = vsel %vm650_vm2, %v3806_v7, 0.0 }
 0x6ac   : > { %1133 = vadd.xlane.f32.xlu0 %v1132_v9  ;;  %v3755_v9 = vld [vmem:[%s4595_s7 + $0x10] sm:$0xff]  }
 0x738   : > { %v1137_v10 = vpop.xlane.xlu1 %1136 }
 0x739   : > { %3807 = vrcp.f32 %v1137_v10  ;;  %v1134_v11 = vpop.xlane.xlu0 %1133  ;;  %v3756_v10 = vld [vmem:[%s4595_s7 + $0x18] sm:$0xff]  }
 0x73a   : > { %3809 = vrcp.f32 %v1134_v11  ;;  %v3757_v11 = vld [vmem:[%s4595_s7 + $0x20] sm:$0xff]  }
 0x743   : > { %v3808_v12 = vpop.eup %3807 }
 0x744   : > { %v3810_v13 = vpop.eup %3809  ;;  %v1141_v19 = vmul.f32 %v3808_v12, %v3804_v6  ;;  %v3758_v12 = vld [vmem:[%s4595_s7 + $0x28] sm:$0xff]  }
 0x745   : > { %v1140_v14 = vmul.f32 %v3810_v13, %v3806_v7  ;;  %v3759_v13 = vld [vmem:[%s4595_s7 + $0x30] sm:$0xff]  }
 0x747   : > { %3473 = vmatprep.mubr.msk.f32.mxu0 %vm650_vm2, %v1140_v14  ;;  %v3760_v14 = vld [vmem:[%s4595_s7 + $0x38] sm:$0xff]  }
 0x748   : > { %3474 = vmatmul.mubr.msk.f32.vlgmr.msra.gmra.mrb[16].mxu0 %vm650_vm2, %v1141_v19 }
 0x749   : > { %3483 = vmatpush3.bf16.msra.mxu0 %v3749_v15  ;;  %3484 = vmatprep.mubr.msk.bf16.mxu0 %vm3920_vm1, %v3919_v16  ;;  %v3134_v15 = vld [vmem:[%s4594_s6] ss:$0 sm:$0xff] }
 0x74a   : > { %3496 = vmatprep.subr.bf16.mxu0 %v3919_v16 }
 0x74c   : > { %3485 = vmatmul.mubr.msk.bf16.vlgmr.msra.gmra.mrb[20].mxu0 %vm650_vm2, %v841_v49 }
 0x74d   : > { %3512 = vmatprep.mubr.msk.bf16.mxu0 %vm3920_vm1, %v3919_v16  ;;  %3497 = vmatpush3.bf16.msra.mxu0 %v3753_v54 }
 0x74e   : > { %3498 = vmatprep.subr.bf16.mxu0 %v3919_v16 }
 0x751   : > { %3499 = vmatpush3.bf16.msra.mxu0 %v3754_v56 }
 0x752   : > { %3500 = vmatprep.subr.bf16.mxu0 %v3919_v16 }
 0x755   : > { %3501 = vmatpush3.bf16.msra.mxu0 %v3755_v9 }
 0x756   : > { %3502 = vmatprep.subr.bf16.mxu0 %v3919_v16 }
 0x759   : > { %3503 = vmatpush3.bf16.msra.mxu0 %v3756_v10 }
 0x75a   : > { %3504 = vmatprep.subr.bf16.mxu0 %v3919_v16 }
 0x75d   : > { %3505 = vmatpush3.bf16.msra.mxu0 %v3757_v11 }
 0x75e   : > { %3506 = vmatprep.subr.bf16.mxu0 %v3919_v16 }
 0x761   : > { %3507 = vmatpush3.bf16.msra.mxu0 %v3758_v12  ;;  %v3763_v12 = vld [vmem:[%s4590_s2 + $0x80] sm:$0xff]  }
 0x762   : > { %3508 = vmatprep.subr.bf16.mxu0 %v3919_v16 }
 0x765   : > { %3509 = vmatpush3.bf16.msra.mxu0 %v3759_v13 }
 0x766   : > { %3510 = vmatprep.subr.bf16.mxu0 %v3919_v16 }
 0x769   : > { %3511 = vmatpush3.bf16.msra.mxu0 %v3760_v14  ;;  %v3764_v14 = vld [vmem:[%s4590_s2 + $0x88] sm:$0xff]  }
 0x81b   : > { %v3475_v21 = vpop.f32.mrb[16].mxu0 }
 0x81c   : > { %v1214_v22 = vpop.f32.mrb[17].mxu0 }
 0x81d   : > { %v1223_v23 = vpack.c.bf16 %v3475_v21, %v1214_v22 }
 0x81f   : > { %3479 = vmatmul.mubr.msk.bf16.vlgmr.msra.gmra.mrb[16].mxu1 %vm650_vm2, %v1223_v23  ;;  %v1320_v24 = vpop.f32.mrb[20].mxu0 }
 0x820   : > { %v3486_v25 = vpop.f32.mrb[21].mxu0  ;;  %3492 = vmatprep.mubr.msk.bf16.mxu1 %vm3920_vm1, %v3919_v16 }
 0x821   : > { %v1323_v26 = vpop.f32.mrb[22].mxu0 }
 0x822   : > { %v3487_v27 = vpop.f32.mrb[23].mxu0 }
 0x8f2   : > { %v1270_v28 = vpop.f32.mrb[16].mxu1 }
 0x8f3   : > { %v1321_v30 = vadd.f32 %v1320_v24, %v1270_v28  ;;  %v3480_v31 = vpop.f32.mrb[17].mxu1 }
 0x8f4   : > { %v1273_v32 = vpop.f32.mrb[18].mxu1 }
 0x8f5   : > { %v1332_v35 = vadd.f32 %v3131_v29, %v1321_v30  ;;  %v1324_v37 = vadd.f32 %v1323_v26, %v1273_v32  ;;  %v3481_v38 = vpop.f32.mrb[19].mxu1 }
 0x8f7   : > { %v1333_v39 = vadd.f32 %v3131_v29, %v1324_v37  ;;  %v1334_v40 = vadd.f32 %v1332_v35, %v4070_v33 }
 0x8f9   : > { %v1338_v41 = vsel %vm416_vm0, %v1334_v40, 0.0  ;;  %v1335_v42 = vadd.f32 %v1333_v39, %v4072_v34  ;;  %v3751_v34 = vld [vmem:[%s4593_s5] sm:$0xff]  }
 0x8fa   : > { %1339 = vadd.xlane.f32.xlu0 %v1338_v41  ;;  %3489 = vmatpush3.bf16.msra.mxu1 %v3751_v34  ;;  %v3138_v39 = vld [vmem:[%s4596_s8 + $0x3] ss:$0 sm:$0xff] }
 0x8fb   : > { %v1341_v43 = vsel %vm416_vm0, %v1335_v42, 0.0  ;;  %3490 = vmatprep.subr.bf16.mxu1 %v3919_v16 }
 0x8fc   : > { %1342 = vadd.xlane.f32.xlu1 %v1341_v43 }
 0x8fe   : > { %3491 = vmatpush3.bf16.msra.mxu1 %v3752_v53 }
 0x8ff   : > { %3516 = vmatprep.subr.bf16.mxu1 %v3919_v16 }
 0x987   : > { %v1340_v44 = vpop.xlane.xlu0 %1339 }
 0x988   : > { %v1344_v45 = vmul.f32 0.03125, %v1340_v44 }
 0x989   : > { %v1343_v46 = vpop.xlane.xlu1 %1342 }
 0x98a   : > { %v1346_v47 = vsub.f32 %v1334_v40, %v1344_v45  ;;  %v1345_v48 = vmul.f32 0.03125, %v1343_v46 }
 0x98c   : > { %v1347_v49 = vsub.f32 %v1335_v42, %v1345_v48  ;;  %v1348_v50 = vmul.f32 %v1346_v47, %v1346_v47 }
 0x98e   : > { %v1350_v51 = vsel %vm416_vm0, %v1348_v50, 0.0  ;;  %v1349_v52 = vmul.f32 %v1347_v49, %v1347_v49 }
 0x98f   : > { %1351 = vadd.xlane.f32.xlu0 %v1350_v51 }
 0x990   : > { %v1353_v33 = vsel %vm416_vm0, %v1349_v52, 0.0 }
 0x991   : > { %1354 = vadd.xlane.f32.xlu1 %v1353_v33 }
 0xa1c   : > { %v1352_v57 = vpop.xlane.xlu0 %1351 }
 0xa1d   : > { %v1356_v58 = vmul.f32 0.03125, %v1352_v57 }
 0xa1e   : > { %v1355_v36 = vpop.xlane.xlu1 %1354 }
 0xa1f   : > { %v1358_v59 = vadd.f32 1e-12, %v1356_v58  ;;  %v1357_v60 = vmul.f32 0.03125, %v1355_v36  ;;  %v3761_v36 = vld [vmem:[%s4590_s2 + $0x60] sm:$0xff]  }
 0xa21   : > { %3811 = vrsqrt.f32 %v1358_v59  ;;  %v1359_v61 = vadd.f32 1e-12, %v1357_v60  ;;  %v3762_v59 = vld [vmem:[%s4590_s2 + $0x68] sm:$0xff]  }
 0xa23   : > { %3813 = vrsqrt.f32 %v1359_v61 }
 0xa2b   : > { %v3812_v62 = vpop.eup %3811 }
 0xa2c   : > { %v1362_v0 = vmul.f32 %v3812_v62, %v1346_v47 }
 0xa2d   : > { %v3814_v1 = vpop.eup %3813 }
 0xa2e   : > { %v1368_v2 = vmul.f32 %v3132_v63, %v1362_v0  ;;  %v1363_v3 = vmul.f32 %v3814_v1, %v1347_v49 }
 0xa30   : > { %v1369_v5 = vmul.f32 %v3132_v63, %v1363_v3  ;;  %v1374_v6 = vadd.f32 %v3133_v4, %v1368_v2  ;;  %v3147_v3 = vld [vmem:[%s4596_s8 + $0x4] ss:$0 sm:$0xff] }
 0xa32   : > { %v1375_v7 = vadd.f32 %v3133_v4, %v1369_v5 }
 0xa34   : > { %v1376_v8 = vpack.c.bf16 %v1375_v7, %v1374_v6 }
 0xa36   : > { %3493 = vmatmul.mubr.msk.bf16.vlgmr.msra.gmra.mrb[20].mxu1 %vm416_vm0, %v1376_v8  ;;  %v3148_v8 = vld [vmem:[%s4596_s8 + $0x5] ss:$0 sm:$0xff] }
 0xa37   : > { %3520 = vmatprep.mubr.msk.bf16.mxu1 %vm3920_vm1, %v3919_v16  ;;  %3517 = vmatpush3.bf16.msra.mxu1 %v3761_v36 }
 0xa38   : > { %3518 = vmatprep.subr.bf16.mxu1 %v3919_v16 }
 0xa3b   : > { %3519 = vmatpush3.bf16.msra.mxu1 %v3762_v59 }
 0xa3c   : > { %3524 = vmatprep.subr.bf16.mxu1 %v3919_v16 }
 0xb09   : > { %v1435_v19 = vpop.f32.mrb[20].mxu1 }
 0xb0a   : > { %v1436_v20 = vadd.f32 %v3134_v15, %v1435_v19  ;;  %v3494_v21 = vpop.f32.mrb[21].mxu1  ;;  %v3766_v19 = vld [vmem:[%s4590_s2 + $0xa8] sm:$0xff]  }
 0xb0b   : > { %v1438_v22 = vpop.f32.mrb[22].mxu1 }
 0xb0c   : > { %v1444_v23 = vmul.f32 0.70710677, %v1436_v20  ;;  %v1439_v24 = vadd.f32 %v3134_v15, %v1438_v22  ;;  %v3495_v25 = vpop.f32.mrb[23].mxu1  ;;  %v1442_v30 = vmul.f32 0.5, %v1436_v20  ;;  %v3765_v15 = vld [vmem:[%s4590_s2 + $0xa0] sm:$0xff]  }
 0xb0d   : > { %v3154_v20 = vld [vmem:[%s4591_s3 + $0x6] ss:$0 sm:$0xff] }
 0xb0e   : > { %3815 = verf.f32 %v1444_v23  ;;  %v1445_v26 = vmul.f32 0.70710677, %v1439_v24  ;;  %v1443_v31 = vmul.f32 0.5, %v1439_v24 }
 0xb10   : > { %3817 = verf.f32 %v1445_v26  ;;  %v3163_v26 = vld [vmem:[%s4591_s3 + $0x8] ss:$0 sm:$0xff] }
 0xb18   : > { %v3816_v27 = vpop.eup %3815 }
 0xb19   : > { %v1448_v28 = vadd.f32 1.0, %v3816_v27 }
 0xb1a   : > { %v3818_v29 = vpop.eup %3817 }
 0xb1b   : > { %v1449_v32 = vadd.f32 1.0, %v3818_v29  ;;  %v1450_v35 = vmul.f32 %v1448_v28, %v1442_v30 }
 0xb1d   : > { %v1451_v37 = vmul.f32 %v1449_v32, %v1443_v31 }
 0xb1f   : > { %v1452_v38 = vpack.c.bf16 %v1451_v37, %v1450_v35  ;;  %v3172_v37 = vld [vmem:[%s4591_s3 + $0xa] ss:$0 sm:$0xff] }
 0xb21   : > { %3513 = vmatmul.mubr.bf16.vlgmr.msra.gmra.mrb[24].mxu0 %v1452_v38 }
 0xbf4   : > { %v1556_v40 = vpop.f32.mrb[24].mxu0 }
 0xbf5   : > { %v1557_v41 = vadd.f32 %v3138_v39, %v1556_v40  ;;  %v3514_v42 = vpop.f32.mrb[25].mxu0 }
 0xbf6   : > { %v1559_v43 = vpop.f32.mrb[26].mxu0 }
 0xbf7   : > { %v1560_v44 = vadd.f32 %v3138_v39, %v1559_v43  ;;  %v3515_v45 = vpop.f32.mrb[27].mxu0  ;;  %v1563_v46 = vadd.f32 %v1557_v41, %v1374_v6 }
 0xbf9   : > { %v1567_v47 = vsel %vm416_vm0, %v1563_v46, 0.0  ;;  %v1564_v48 = vadd.f32 %v1560_v44, %v1375_v7  ;;  %v3767_v44 = vld [vmem:[%s4590_s2 + $0x70] sm:$0xff]  }
 0xbfa   : > { %1568 = vadd.xlane.f32.xlu0 %v1567_v47  ;;  %v3768_v47 = vld [vmem:[%s4590_s2 + $0x78] sm:$0xff]  }
 0xbfb   : > { %v1570_v49 = vsel %vm416_vm0, %v1564_v48, 0.0 }
 0xbfc   : > { %1571 = vadd.xlane.f32.xlu1 %v1570_v49  ;;  %v3770_v49 = vld [vmem:[%s4590_s2 + $0xb8] sm:$0xff]  }
 0xc87   : > { %v1569_v50 = vpop.xlane.xlu0 %1568 }
 0xc88   : > { %v1573_v51 = vmul.f32 0.03125, %v1569_v50 }
 0xc89   : > { %v1572_v52 = vpop.xlane.xlu1 %1571 }
 0xc8a   : > { %v1575_v33 = vsub.f32 %v1563_v46, %v1573_v51  ;;  %v1574_v34 = vmul.f32 0.03125, %v1572_v52 }
 0xc8c   : > { %v1576_v53 = vsub.f32 %v1564_v48, %v1574_v34  ;;  %v1577_v54 = vmul.f32 %v1575_v33, %v1575_v33  ;;  %v3769_v48 = vld [vmem:[%s4590_s2 + $0xb0] sm:$0xff]  }
 0xc8e   : > { %v1579_v56 = vsel %vm416_vm0, %v1577_v54, 0.0  ;;  %v1578_v57 = vmul.f32 %v1576_v53, %v1576_v53 }
 0xc8f   : > { %1580 = vadd.xlane.f32.xlu0 %v1579_v56 }
 0xc90   : > { %v1582_v58 = vsel %vm416_vm0, %v1578_v57, 0.0  ;;  %v3189_v57 = vld [vmem:[%s4591_s3 + $0x7] ss:$0 sm:$0xff] }
 0xc91   : > { %1583 = vadd.xlane.f32.xlu1 %v1582_v58 }
 0xd1c   : > { %v1581_v60 = vpop.xlane.xlu0 %1580 }
 0xd1d   : > { %v1585_v61 = vmul.f32 0.03125, %v1581_v60  ;;  %v3207_v60 = vld [vmem:[%s4591_s3 + $0xb] ss:$0 sm:$0xff] }
 0xd1e   : > { %v1584_v62 = vpop.xlane.xlu1 %1583 }
 0xd1f   : > { %v1587_v63 = vadd.f32 1e-12, %v1585_v61  ;;  %v1586_v0 = vmul.f32 0.03125, %v1584_v62 }
 0xd21   : > { %3819 = vrsqrt.f32 %v1587_v63  ;;  %v1588_v1 = vadd.f32 1e-12, %v1586_v0 }
 0xd23   : > { %3821 = vrsqrt.f32 %v1588_v1 }
 0xd2b   : > { %v3820_v2 = vpop.eup %3819 }
 0xd2c   : > { %v1591_v4 = vmul.f32 %v3820_v2, %v1575_v33 }
 0xd2d   : > { %v3822_v5 = vpop.eup %3821 }
 0xd2e   : > { %v1597_v6 = vmul.f32 %v3147_v3, %v1591_v4  ;;  %v1592_v7 = vmul.f32 %v3822_v5, %v1576_v53 }
 0xd30   : > { %v1598_v9 = vmul.f32 %v3147_v3, %v1592_v7  ;;  %v4294_v10 = vadd.f32 %v3148_v8, %v1597_v6 }
 0xd32   : > { %v4296_v11 = vadd.f32 %v3148_v8, %v1598_v9 }
 0xd34   : > { %v4303_v13 = vpack.c.bf16 %v4296_v11, %v4294_v10 }
 0xd36   : > { %3521 = vmatmul.mubr.msk.bf16.vlgmr.msra.gmra.mrb[24].mxu1 %vm416_vm0, %v4303_v13 }
 0xd37   : > { %3525 = vmatpush3.bf16.msra.mxu1 %v3763_v12  ;;  %3528 = vmatprep.mubr.msk.bf16.mxu1 %vm3920_vm1, %v3919_v16 }
 0xd38   : > { %3526 = vmatprep.subr.bf16.mxu1 %v3919_v16 }
 0xd3b   : > { %3527 = vmatpush3.bf16.msra.mxu1 %v3764_v14 }
 0xd3c   : > { %3532 = vmatprep.subr.bf16.mxu1 %v3919_v16 }
 0xd3e   : > { %3529 = vmatmul.mubr.msk.bf16.vlgmr.msra.gmra.mrb[28].mxu1 %vm416_vm0, %v4303_v13 }
 0xd3f   : > { %3533 = vmatpush3.bf16.msra.mxu1 %v3765_v15  ;;  %3536 = vmatprep.mubr.msk.bf16.mxu1 %vm3920_vm1, %v3919_v16 }
 0xd40   : > { %3534 = vmatprep.subr.bf16.mxu1 %v3919_v16 }
 0xd43   : > { %3535 = vmatpush3.bf16.msra.mxu1 %v3766_v19 }
 0xd46   : > { %3537 = vmatmul.mubr.msk.bf16.vlgmr.msra.gmra.mrb[32].mxu1 %vm416_vm0, %v4303_v13 }
 0xe09   : > { %v1666_v21 = vpop.f32.mrb[24].mxu1 }
 0xe0a   : > { %v1667_v22 = vadd.f32 %v3154_v20, %v1666_v21  ;;  %v3522_v23 = vpop.f32.mrb[25].mxu1 }
 0xe0b   : > { %v1669_v24 = vpop.f32.mrb[26].mxu1 }
 0xe0c   : > { %v3523_v25 = vpop.f32.mrb[27].mxu1  ;;  %3544 = vmatprep.mubr.msk.f32.mxu1 %vm650_vm2, %v1667_v22  ;;  %v1670_v45 = vadd.f32 %v3154_v20, %v1669_v24 }
 0xe0d   : > { %v3771_v25 = vld [vmem:[%s4590_s2 + $0x90] sm:$0xff]  }
 0xe11   : > { %v1730_v27 = vpop.f32.mrb[28].mxu1 }
 0xe12   : > { %v3530_v28 = vpop.f32.mrb[29].mxu1  ;;  %v1731_v30 = vadd.f32 %v3163_v26, %v1730_v27  ;;  %v3772_v27 = vld [vmem:[%s4590_s2 + $0x98] sm:$0xff]  }
 0xe13   : > { %v1733_v29 = vpop.f32.mrb[30].mxu1 }
 0xe14   : > { %v1734_v31 = vadd.f32 %v3163_v26, %v1733_v29  ;;  %v3531_v32 = vpop.f32.mrb[31].mxu1 }
 0xe15   : > { %v3198_v32 = vld [vmem:[%s4591_s3 + $0x9] ss:$0 sm:$0xff] }
 0xe16   : > { %v3676_v35 = vpack.c.bf16 %v1734_v31, %v1731_v30 }
 0xe18   : > { %3678 = vmatprep.subr.msk.bf16.mxu1 %vm4126_vm3, %v3676_v35 }
 0xe19   : > { %v1794_v38 = vpop.f32.mrb[32].mxu1  ;;  %3681 = vmatpush3.bf16.xpose.msk.msra.mxu1 %vm4126_vm3, %v3676_v35 }
 0xe1a   : > { %v3538_v39 = vpop.f32.mrb[33].mxu1  ;;  %3554 = vmatprep.subr.bf16.mxu1 %v3919_v16  ;;  %v1795_v41 = vadd.f32 %v3172_v37, %v1794_v38 }
 0xe1b   : > { %v1797_v40 = vpop.f32.mrb[34].mxu1 }
 0xe1c   : > { %v1798_v42 = vadd.f32 %v3172_v37, %v1797_v40  ;;  %v3539_v43 = vpop.f32.mrb[35].mxu1 }
 0xe1e   : > { %v3682_v46 = vpack.c.bf16 %v1798_v42, %v1795_v41 }
 0xe20   : > { %3545 = vmatmul.mubr.msk.f32.vlgmr.msra.gmra.mrb[14].mxu1 %vm650_vm2, %v1670_v45  ;;  %3683 = vmatprep.subr.bf16.mxu0 %v3682_v46 }
 0xe21   : > { %3685 = vmatpush3.bf16.msra.mxu0 %v3682_v46  ;;  %3555 = vmatpush3.bf16.msra.mxu1 %v3767_v44 }
 0xe22   : > { %3556 = vmatprep.subr.bf16.mxu1 %v3919_v16  ;;  %3558 = vmatprep.mubr.msk.bf16.mxu1 %vm3920_vm1, %v3919_v16 }
 0xe23   : > { %3562 = vmatprep.subr.bf16.mxu0 %v3919_v16 }
 0xe25   : > { %3557 = vmatpush3.bf16.msra.mxu1 %v3768_v47 }
 0xe26   : > { %3570 = vmatprep.subr.bf16.mxu1 %v3919_v16 }
 0xe28   : > { %3559 = vmatmul.mubr.msk.bf16.vlgmr.msra.gmra.mrb[36].mxu1 %vm416_vm0, %v4303_v13 }
 0xe29   : > { %3571 = vmatpush3.bf16.msra.mxu1 %v3769_v48  ;;  %3574 = vmatprep.mubr.msk.bf16.mxu1 %vm3920_vm1, %v3919_v16 }
 0xe2a   : > { %3572 = vmatprep.subr.bf16.mxu1 %v3919_v16 }
 0xe2d   : > { %3573 = vmatpush3.bf16.msra.mxu1 %v3770_v49 }
 0xe2e   : > { %3592 = vmatprep.subr.bf16.mxu1 %v3919_v16 }
 0xe30   : > { %3575 = vmatmul.mubr.msk.bf16.vlgmr.msra.gmra.mrb[40].mxu1 %vm416_vm0, %v4303_v13 }
 0xe31   : > { %3594 = vmatprep.mubr.msk.bf16.mxu1 %vm3920_vm1, %v3919_v16 }
 0xef3   : > { %v3546_v50 = vpop.f32.mrb[14].mxu1 }
 0xef4   : > { %v1885_v51 = vadd.f32 %v3546_v50, %v4153_v17  ;;  %v1879_v52 = vpop.f32.mrb[15].mxu1 }
 0xef5   : > { %v1880_v33 = vadd.f32 %v1879_v52, %v4155_v18 }
 0xef6   : > { %v1891_v34 = vsel %vm650_vm2, %v1885_v51, -inf }
 0xef7   : > { %1892 = vmax.xlane.f32.xlu1 %v1891_v34  ;;  %v1888_v53 = vsel %vm650_vm2, %v1880_v33, -inf }
 0xef8   : > { %1889 = vmax.xlane.f32.xlu0 %v1888_v53  ;;  %v3774_v53 = vld [vmem:[%s4592_s4 + $0x18] sm:$0xff]  }
 0xef9   : > { %3593 = vmatpush3.bf16.msra.mxu1 %v3774_v53  ;;  %v3783_v53 = vld [vmem:[%s4595_s7 + $0x70] sm:$0xff]  }
 0xefa   : > { %3604 = vmatprep.subr.bf16.mxu1 %v3919_v16 }
 0xefb   : > { %v2051_v54 = vpop.f32.mrb[36].mxu1 }
 0xefc   : > { %v3560_v56 = vpop.f32.mrb[37].mxu1  ;;  %v2052_v28 = vadd.f32 %v3189_v57, %v2051_v54 }
 0xefd   : > { %v2054_v58 = vpop.f32.mrb[38].mxu1 }
 0xefe   : > { %v2055_v36 = vadd.f32 %v3189_v57, %v2054_v58  ;;  %v3561_v59 = vpop.f32.mrb[39].mxu1 }
 0xeff   : > { %v3773_v59 = vld [vmem:[%s4592_s4 + $0x10] sm:$0xff]  }
 0xf03   : > { %v2177_v61 = vpop.f32.mrb[40].mxu1 }
 0xf04   : > { %v3576_v62 = vpop.f32.mrb[41].mxu1  ;;  %v2178_v0 = vadd.f32 %v3207_v60, %v2177_v61 }
 0xf05   : > { %v2180_v63 = vpop.f32.mrb[42].mxu1 }
 0xf06   : > { %v2181_v1 = vadd.f32 %v3207_v60, %v2180_v63  ;;  %v3577_v2 = vpop.f32.mrb[43].mxu1 }
 0xf08   : > { %v3692_v3 = vpack.c.bf16 %v2181_v1, %v2178_v0 }
 0xf84   : > { %v1893_v4 = vpop.xlane.xlu1 %1892 }
 0xf85   : > { %v1895_v5 = vsub.f32 %v1885_v51, %v1893_v4  ;;  %v1890_v6 = vpop.xlane.xlu0 %1889 }
 0xf86   : > { %v1894_v7 = vsub.f32 %v1880_v33, %v1890_v6 }
 0xf87   : > { %v1898_v8 = vmul.f32 1.442695, %v1895_v5  ;;  %v3224_v5 = vld [vmem:[%s4596_s8 + $0x8] ss:$0 sm:$0xff] }
 0xf88   : > { %v1896_v9 = vmul.f32 1.442695, %v1894_v7 }
 0xf89   : > { %3823 = vpow2.f32 %v1898_v8 }
 0xf8a   : > { %3825 = vpow2.f32 %v1896_v9 }
 0xf93   : > { %v3824_v12 = vpop.eup %3823 }
 0xf94   : > { %v3826_v14 = vpop.eup %3825  ;;  %v1903_v15 = vsel %vm650_vm2, %v3824_v12, 0.0 }
 0xf95   : > { %1904 = vadd.xlane.f32.xlu1 %v1903_v15  ;;  %v1900_v19 = vsel %vm650_vm2, %v3826_v14, 0.0 }
 0xf96   : > { %1901 = vadd.xlane.f32.xlu0 %v1900_v19 }
0x1022   : > { %v1905_v20 = vpop.xlane.xlu1 %1904 }
0x1023   : > { %3827 = vrcp.f32 %v1905_v20  ;;  %v1902_v21 = vpop.xlane.xlu0 %1901 }
0x1024   : > { %3829 = vrcp.f32 %v1902_v21 }
0x102d   : > { %v3828_v22 = vpop.eup %3827 }
0x102e   : > { %v3830_v23 = vpop.eup %3829  ;;  %v1909_v26 = vmul.f32 %v3828_v22, %v3824_v12 }
0x102f   : > { %v1908_v24 = vmul.f32 %v3830_v23, %v3826_v14 }
0x1031   : > { %3551 = vmatprep.mubr.msk.f32.mxu0 %vm650_vm2, %v1908_v24 }
0x1032   : > { %3552 = vmatmul.mubr.msk.f32.vlgmr.msra.gmra.mrb[18].mxu0 %vm650_vm2, %v1909_v26 }
0x1033   : > { %3563 = vmatpush3.bf16.msra.mxu0 %v3771_v25  ;;  %3566 = vmatprep.mubr.msk.bf16.mxu0 %vm3920_vm1, %v3919_v16 }
0x1034   : > { %3564 = vmatprep.subr.bf16.mxu0 %v3919_v16 }
0x1037   : > { %3565 = vmatpush3.bf16.msra.mxu0 %v3772_v27 }
0x103a   : > { %3567 = vmatmul.mubr.msk.bf16.vlgmr.msra.gmra.mrb[28].mxu0 %vm416_vm0, %v4303_v13 }
0x103b   : > { %3582 = vmatprep.mubr.msk.f32.mxu0 %vm650_vm2, %v2052_v28 }
0x1105   : > { %v3553_v29 = vpop.f32.mrb[18].mxu0 }
0x1106   : > { %v1982_v30 = vpop.f32.mrb[19].mxu0 }
0x1107   : > { %v1991_v31 = vpack.c.bf16 %v3553_v29, %v1982_v30 }
0x110d   : > { %v2114_v35 = vpop.f32.mrb[28].mxu0 }
0x110e   : > { %v3568_v37 = vpop.f32.mrb[29].mxu0  ;;  %v2115_v39 = vadd.f32 %v3198_v32, %v2114_v35  ;;  %v3777_v35 = vld [vmem:[%s4595_s7 + $0x40] sm:$0xff]  }
0x110f   : > { %v2117_v38 = vpop.f32.mrb[30].mxu0  ;;  %v3778_v37 = vld [vmem:[%s4595_s7 + $0x48] sm:$0xff]  }
0x1110   : > { %v2118_v40 = vadd.f32 %v3198_v32, %v2117_v38  ;;  %v3569_v41 = vpop.f32.mrb[31].mxu0  ;;  %v3776_v32 = vld [vmem:[%s4593_s5 + $0x18] sm:$0xff]  }
0x1112   : > { %v3686_v42 = vpack.c.bf16 %v2118_v40, %v2115_v39 }
0x1114   : > { %3688 = vmatprep.subr.msk.bf16.mxu0 %vm4126_vm3, %v3686_v42 }
0x1115   : > { %3691 = vmatpush3.bf16.xpose.msk.msra.mxu0 %vm4126_vm3, %v3686_v42 }
0x1116   : > { %3693 = vmatprep.subr.bf16.mxu0 %v3692_v3 }
0x111c   : > { %3583 = vmatmul.mubr.msk.f32.vlgmr.msra.gmra.mrb[32].mxu0 %vm650_vm2, %v2055_v36 }
0x111d   : > { %3695 = vmatpush3.bf16.msra.mxu0 %v3692_v3 }
0x111e   : > { %3598 = vmatprep.subr.bf16.mxu0 %v3919_v16 }
0x11ef   : > { %v3584_v13 = vpop.f32.mrb[32].mxu0 }
0x11f0   : > { %v2268_v43 = vadd.f32 %v3584_v13, %v4153_v17  ;;  %v2262_v44 = vpop.f32.mrb[33].mxu0 }
0x11f1   : > { %v2263_v45 = vadd.f32 %v2262_v44, %v4155_v18  ;;  %v3227_v44 = vld [vmem:[%s4596_s8 + $0x9] ss:$0 sm:$0xff] }
0x11f2   : > { %v2274_v46 = vsel %vm650_vm2, %v2268_v43, -inf }
0x11f3   : > { %2275 = vmax.xlane.f32.xlu1 %v2274_v46  ;;  %v2271_v47 = vsel %vm650_vm2, %v2263_v45, -inf }
0x11f4   : > { %2272 = vmax.xlane.f32.xlu0 %v2271_v47 }
0x1280   : > { %v2276_v55 = vpop.xlane.xlu1 %2275 }
0x1281   : > { %v2278_v48 = vsub.f32 %v2268_v43, %v2276_v55  ;;  %v2273_v49 = vpop.xlane.xlu0 %2272 }
0x1282   : > { %v2277_v50 = vsub.f32 %v2263_v45, %v2273_v49 }
0x1283   : > { %v2281_v51 = vmul.f32 1.442695, %v2278_v48  ;;  %v3228_v48 = vld [vmem:[%s4596_s8 + $0xa] ss:$0 sm:$0xff] }
0x1284   : > { %v2279_v52 = vmul.f32 1.442695, %v2277_v50 }
0x1285   : > { %3831 = vpow2.f32 %v2281_v51 }
0x1286   : > { %3833 = vpow2.f32 %v2279_v52 }
0x128f   : > { %v3832_v33 = vpop.eup %3831 }
0x1290   : > { %v3834_v34 = vpop.eup %3833  ;;  %v2286_v17 = vsel %vm650_vm2, %v3832_v33, 0.0 }
0x1291   : > { %2287 = vadd.xlane.f32.xlu1 %v2286_v17  ;;  %v2283_v18 = vsel %vm650_vm2, %v3834_v34, 0.0  ;;  %v3781_v17 = vld [vmem:[%s4595_s7 + $0x60] sm:$0xff]  }
0x1292   : > { %2284 = vadd.xlane.f32.xlu0 %v2283_v18  ;;  %v3782_v18 = vld [vmem:[%s4595_s7 + $0x68] sm:$0xff]  }
0x131e   : > { %v2288_v54 = vpop.xlane.xlu1 %2287 }
0x131f   : > { %3835 = vrcp.f32 %v2288_v54  ;;  %v2285_v56 = vpop.xlane.xlu0 %2284  ;;  %v3784_v54 = vld [vmem:[%s4595_s7 + $0x78] sm:$0xff]  }
0x1320   : > { %3837 = vrcp.f32 %v2285_v56  ;;  %v3233_v56 = vld [vmem:[%s4594_s6 + $0x1] ss:$0 sm:$0xff] }
0x1329   : > { %v3836_v57 = vpop.eup %3835 }
0x132a   : > { %v3838_v58 = vpop.eup %3837  ;;  %v2292_v60 = vmul.f32 %v3836_v57, %v3832_v33  ;;  %v3779_v33 = vld [vmem:[%s4595_s7 + $0x50] sm:$0xff]  }
0x132b   : > { %v2291_v36 = vmul.f32 %v3838_v58, %v3834_v34  ;;  %v3780_v34 = vld [vmem:[%s4595_s7 + $0x58] sm:$0xff]  }
0x132d   : > { %3589 = vmatprep.mubr.msk.f32.mxu0 %vm650_vm2, %v2291_v36 }
0x132e   : > { %3590 = vmatmul.mubr.msk.f32.vlgmr.msra.gmra.mrb[34].mxu0 %vm650_vm2, %v2292_v60 }
0x132f   : > { %3599 = vmatpush3.bf16.msra.mxu0 %v3773_v59  ;;  %3600 = vmatprep.mubr.msk.bf16.mxu0 %vm3920_vm1, %v3919_v16 }
0x1330   : > { %3612 = vmatprep.subr.bf16.mxu0 %v3919_v16 }
0x1332   : > { %3601 = vmatmul.mubr.msk.bf16.vlgmr.msra.gmra.mrb[36].mxu0 %vm650_vm2, %v1991_v31 }
0x1333   : > { %3628 = vmatprep.mubr.msk.bf16.mxu0 %vm3920_vm1, %v3919_v16  ;;  %3613 = vmatpush3.bf16.msra.mxu0 %v3777_v35 }
0x1334   : > { %3614 = vmatprep.subr.bf16.mxu0 %v3919_v16 }
0x1337   : > { %3615 = vmatpush3.bf16.msra.mxu0 %v3778_v37  ;;  %v3785_v37 = vld [vmem:[%s4598_s10] sm:$0xff]  }
0x1338   : > { %3616 = vmatprep.subr.bf16.mxu0 %v3919_v16 }
0x133b   : > { %3617 = vmatpush3.bf16.msra.mxu0 %v3779_v33 }
0x133c   : > { %3618 = vmatprep.subr.bf16.mxu0 %v3919_v16 }
0x133f   : > { %3619 = vmatpush3.bf16.msra.mxu0 %v3780_v34 }
0x1340   : > { %3620 = vmatprep.subr.bf16.mxu0 %v3919_v16 }
0x1343   : > { %3621 = vmatpush3.bf16.msra.mxu0 %v3781_v17 }
0x1344   : > { %3622 = vmatprep.subr.bf16.mxu0 %v3919_v16 }
0x1347   : > { %3623 = vmatpush3.bf16.msra.mxu0 %v3782_v18  ;;  %v3787_v18 = vld [vmem:[%s4598_s10 + $0x10] sm:$0xff]  }
0x1348   : > { %3624 = vmatprep.subr.bf16.mxu0 %v3919_v16 }
0x134b   : > { %3625 = vmatpush3.bf16.msra.mxu0 %v3783_v53  ;;  %v3788_v53 = vld [vmem:[%s4598_s10 + $0x18] sm:$0xff]  }
0x134c   : > { %3626 = vmatprep.subr.bf16.mxu0 %v3919_v16 }
0x134f   : > { %3627 = vmatpush3.bf16.msra.mxu0 %v3784_v54  ;;  %v3267_v54 = vld [vmem:[%s4597_s9 + $0x2] ss:$0 sm:$0xff] }
0x1401   : > { %v3591_v61 = vpop.f32.mrb[34].mxu0 }
0x1402   : > { %v2365_v62 = vpop.f32.mrb[35].mxu0 }
0x1403   : > { %v2374_v63 = vpack.c.bf16 %v3591_v61, %v2365_v62 }
0x1405   : > { %3595 = vmatmul.mubr.msk.bf16.vlgmr.msra.gmra.mrb[44].mxu1 %vm650_vm2, %v2374_v63  ;;  %v2471_v0 = vpop.f32.mrb[36].mxu0 }
0x1406   : > { %v3602_v1 = vpop.f32.mrb[37].mxu0  ;;  %3608 = vmatprep.mubr.msk.bf16.mxu1 %vm3920_vm1, %v3919_v16 }
0x1407   : > { %v2474_v2 = vpop.f32.mrb[38].mxu0 }
0x1408   : > { %v3603_v3 = vpop.f32.mrb[39].mxu0 }
0x14d8   : > { %v2421_v4 = vpop.f32.mrb[44].mxu1 }
0x14d9   : > { %v2472_v6 = vadd.f32 %v2471_v0, %v2421_v4  ;;  %v3596_v7 = vpop.f32.mrb[45].mxu1 }
0x14da   : > { %v2424_v8 = vpop.f32.mrb[46].mxu1 }
0x14db   : > { %v2484_v9 = vadd.f32 %v3224_v5, %v2472_v6  ;;  %v2475_v12 = vadd.f32 %v2474_v2, %v2424_v8  ;;  %v3597_v14 = vpop.f32.mrb[47].mxu1 }
0x14dd   : > { %v2485_v15 = vadd.f32 %v3224_v5, %v2475_v12  ;;  %v2486_v19 = vadd.f32 %v2484_v9, %v4294_v10  ;;  %v3254_v9 = vld [vmem:[%s4596_s8 + $0xb] ss:$0 sm:$0xff] }
0x14df   : > { %v2490_v20 = vsel %vm416_vm0, %v2486_v19, 0.0  ;;  %v2487_v21 = vadd.f32 %v2485_v15, %v4296_v11  ;;  %v3775_v11 = vld [vmem:[%s4593_s5 + $0x10] sm:$0xff]  }
0x14e0   : > { %2491 = vadd.xlane.f32.xlu0 %v2490_v20  ;;  %3605 = vmatpush3.bf16.msra.mxu1 %v3775_v11 }
0x14e1   : > { %v2493_v22 = vsel %vm416_vm0, %v2487_v21, 0.0  ;;  %3606 = vmatprep.subr.bf16.mxu1 %v3919_v16 }
0x14e2   : > { %2494 = vadd.xlane.f32.xlu1 %v2493_v22 }
0x14e4   : > { %3607 = vmatpush3.bf16.msra.mxu1 %v3776_v32 }
0x14e5   : > { %3632 = vmatprep.subr.bf16.mxu1 %v3919_v16 }
0x156d   : > { %v2492_v23 = vpop.xlane.xlu0 %2491 }
0x156e   : > { %v2496_v24 = vmul.f32 0.03125, %v2492_v23 }
0x156f   : > { %v2495_v25 = vpop.xlane.xlu1 %2494 }
0x1570   : > { %v2498_v26 = vsub.f32 %v2486_v19, %v2496_v24  ;;  %v2497_v27 = vmul.f32 0.03125, %v2495_v25 }
0x1572   : > { %v2499_v28 = vsub.f32 %v2487_v21, %v2497_v27  ;;  %v2500_v29 = vmul.f32 %v2498_v26, %v2498_v26 }
0x1574   : > { %v2502_v30 = vsel %vm416_vm0, %v2500_v29, 0.0  ;;  %v2501_v31 = vmul.f32 %v2499_v28, %v2499_v28 }
0x1575   : > { %2503 = vadd.xlane.f32.xlu0 %v2502_v30 }
0x1576   : > { %v2505_v10 = vsel %vm416_vm0, %v2501_v31, 0.0 }
0x1577   : > { %2506 = vadd.xlane.f32.xlu1 %v2505_v10 }
0x1602   : > { %v2504_v38 = vpop.xlane.xlu0 %2503 }
0x1603   : > { %v2508_v39 = vmul.f32 0.03125, %v2504_v38  ;;  %v3786_v38 = vld [vmem:[%s4598_s10 + $0x8] sm:$0xff]  }
0x1604   : > { %v2507_v40 = vpop.xlane.xlu1 %2506 }
0x1605   : > { %v2510_v41 = vadd.f32 1e-12, %v2508_v39  ;;  %v2509_v42 = vmul.f32 0.03125, %v2507_v40 }
0x1607   : > { %3839 = vrsqrt.f32 %v2510_v41  ;;  %v2511_v13 = vadd.f32 1e-12, %v2509_v42 }
0x1609   : > { %3841 = vrsqrt.f32 %v2511_v13 }
0x1611   : > { %v3840_v43 = vpop.eup %3839 }
0x1612   : > { %v2514_v45 = vmul.f32 %v3840_v43, %v2498_v26 }
0x1613   : > { %v3842_v46 = vpop.eup %3841 }
0x1614   : > { %v2520_v47 = vmul.f32 %v3227_v44, %v2514_v45  ;;  %v2515_v55 = vmul.f32 %v3842_v46, %v2499_v28 }
0x1616   : > { %v2521_v49 = vmul.f32 %v3227_v44, %v2515_v55  ;;  %v2526_v50 = vadd.f32 %v3228_v48, %v2520_v47  ;;  %v3265_v47 = vld [vmem:[%s4596_s8 + $0xc] ss:$0 sm:$0xff] }
0x1618   : > { %v2527_v51 = vadd.f32 %v3228_v48, %v2521_v49 }
0x161a   : > { %v2528_v52 = vpack.c.bf16 %v2527_v51, %v2526_v50 }
0x161c   : > { %3609 = vmatmul.mubr.msk.bf16.vlgmr.msra.gmra.mrb[48].mxu1 %vm416_vm0, %v2528_v52 }
0x161d   : > { %3636 = vmatprep.mubr.msk.bf16.mxu1 %vm3920_vm1, %v3919_v16  ;;  %3633 = vmatpush3.bf16.msra.mxu1 %v3785_v37 }
0x161e   : > { %3634 = vmatprep.subr.bf16.mxu1 %v3919_v16 }
0x1621   : > { %3635 = vmatpush3.bf16.msra.mxu1 %v3786_v38 }
0x1622   : > { %3640 = vmatprep.subr.bf16.mxu1 %v3919_v16 }
0x16ef   : > { %v2588_v57 = vpop.f32.mrb[48].mxu1 }
0x16f0   : > { %v2589_v58 = vadd.f32 %v3233_v56, %v2588_v57  ;;  %v3610_v36 = vpop.f32.mrb[49].mxu1 }
0x16f1   : > { %v2591_v59 = vpop.f32.mrb[50].mxu1 }
0x16f2   : > { %v2597_v60 = vmul.f32 0.70710677, %v2589_v58  ;;  %v2592_v61 = vadd.f32 %v3233_v56, %v2591_v59  ;;  %v3611_v62 = vpop.f32.mrb[51].mxu1  ;;  %v2595_v3 = vmul.f32 0.5, %v2589_v58 }
0x16f3   : > { %v3789_v62 = vld [vmem:[%s4598_s10 + $0x20] sm:$0xff]  }
0x16f4   : > { %3843 = verf.f32 %v2597_v60  ;;  %v2598_v63 = vmul.f32 0.70710677, %v2592_v61  ;;  %v2596_v4 = vmul.f32 0.5, %v2592_v61 }
0x16f6   : > { %3845 = verf.f32 %v2598_v63  ;;  %v3790_v63 = vld [vmem:[%s4598_s10 + $0x28] sm:$0xff]  }
0x16fe   : > { %v3844_v0 = vpop.eup %3843 }
0x16ff   : > { %v2601_v1 = vadd.f32 1.0, %v3844_v0  ;;  %v3275_v0 = vld [vmem:[%s4597_s9 + $0x3] ss:$0 sm:$0xff] }
0x1700   : > { %v3846_v2 = vpop.eup %3845 }
0x1701   : > { %v2602_v5 = vadd.f32 1.0, %v3846_v2  ;;  %v2603_v6 = vmul.f32 %v2601_v1, %v2595_v3 }
0x1703   : > { %v2604_v7 = vmul.f32 %v2602_v5, %v2596_v4 }
0x1705   : > { %v2605_v8 = vpack.c.bf16 %v2604_v7, %v2603_v6 }
0x1707   : > { %3629 = vmatmul.mubr.bf16.vlgmr.msra.gmra.mrb[40].mxu0 %v2605_v8 }
0x17da   : > { %v2710_v12 = vpop.f32.mrb[40].mxu0 }
0x17db   : > { %v2711_v14 = vadd.f32 %v3254_v9, %v2710_v12  ;;  %v3630_v15 = vpop.f32.mrb[41].mxu0 }
0x17dc   : > { %v2713_v19 = vpop.f32.mrb[42].mxu0 }
0x17dd   : > { %v2714_v20 = vadd.f32 %v3254_v9, %v2713_v19  ;;  %v3631_v21 = vpop.f32.mrb[43].mxu0  ;;  %v2717_v22 = vadd.f32 %v2711_v14, %v2526_v50  ;;  %v3266_v50 = vld [vmem:[%s4596_s8 + $0xd] ss:$0 sm:$0xff]  ;;  %v3283_v14 = vld [vmem:[%s4597_s9 + $0x4] ss:$0 sm:$0xff] }
0x17df   : > { %v2721_v23 = vsel %vm416_vm0, %v2717_v22, 0.0  ;;  %v2718_v24 = vadd.f32 %v2714_v20, %v2527_v51 }
0x17e0   : > { %2722 = vadd.xlane.f32.xlu1 %v2721_v23 }
0x17e1   : > { %v2724_v25 = vsel %vm416_vm0, %v2718_v24, 0.0 }
0x17e2   : > { %2725 = vadd.xlane.f32.xlu0 %v2724_v25 }
0x186d   : > { %v2723_v26 = vpop.xlane.xlu1 %2722 }
0x186e   : > { %v2727_v27 = vmul.f32 0.03125, %v2723_v26 }
0x186f   : > { %v2726_v28 = vpop.xlane.xlu0 %2725 }
0x1870   : > { %v2729_v29 = vsub.f32 %v2717_v22, %v2727_v27  ;;  %v2728_v30 = vmul.f32 0.03125, %v2726_v28 }
0x1872   : > { %v2730_v31 = vsub.f32 %v2718_v24, %v2728_v30  ;;  %v2731_v10 = vmul.f32 %v2729_v29, %v2729_v29 }
0x1874   : > { %v2733_v11 = vsel %vm416_vm0, %v2731_v10, 0.0  ;;  %v2732_v32 = vmul.f32 %v2730_v31, %v2730_v31 }
0x1875   : > { %2734 = vadd.xlane.f32.xlu1 %v2733_v11 }
0x1876   : > { %v2736_v35 = vsel %vm416_vm0, %v2732_v32, 0.0 }
0x1877   : > { %2737 = vadd.xlane.f32.xlu0 %v2736_v35 }
0x1902   : > { %v2735_v39 = vpop.xlane.xlu1 %2734 }
0x1903   : > { %v2739_v40 = vmul.f32 0.03125, %v2735_v39 }
0x1904   : > { %v2738_v41 = vpop.xlane.xlu0 %2737 }
0x1905   : > { %v2741_v42 = vadd.f32 1e-12, %v2739_v40  ;;  %v2740_v13 = vmul.f32 0.03125, %v2738_v41 }
0x1907   : > { %3847 = vrsqrt.f32 %v2741_v42  ;;  %v2742_v43 = vadd.f32 1e-12, %v2740_v13 }
0x1909   : > { %3849 = vrsqrt.f32 %v2742_v43 }
0x1911   : > { %v3848_v44 = vpop.eup %3847 }
0x1912   : > { %v2745_v45 = vmul.f32 %v3848_v44, %v2729_v29 }
0x1913   : > { %v3850_v46 = vpop.eup %3849 }
0x1914   : > { %v2746_v55 = vmul.f32 %v3850_v46, %v2730_v31  ;;  %v2751_v48 = vmul.f32 %v3265_v47, %v2745_v45 }
0x1916   : > { %v2752_v49 = vmul.f32 %v3265_v47, %v2746_v55  ;;  %v2757_v52 = vadd.f32 %v3266_v50, %v2751_v48 }
0x1918   : > { %v2758_v51 = vadd.f32 %v3266_v50, %v2752_v49 }
0x191a   : > { %v2760_v33 = vrot.slane %v2758_v51, 7 }
0x191c   : > { %v2763_v34 = vsel %vm2762_vm4, %v2757_v52, %v2760_v33 }
0x191d   : > { %v2764_v17 = vpack.c.bf16 %v2763_v34, %v2763_v34 }
0x191f   : > { %3637 = vmatmul.mubr.msk.bf16.vlgmr.msra.gmra.mrb[52].mxu1 %vm416_vm0, %v2764_v17 }
0x1920   : > { %3644 = vmatprep.mubr.msk.bf16.mxu1 %vm3920_vm1, %v3919_v16  ;;  %3641 = vmatpush3.bf16.msra.mxu1 %v3787_v18 }
0x1921   : > { %3642 = vmatprep.subr.bf16.mxu1 %v3919_v16 }
0x1924   : > { %3643 = vmatpush3.bf16.msra.mxu1 %v3788_v53 }
0x1925   : > { %3648 = vmatprep.subr.bf16.mxu1 %v3919_v16 }
0x19f2   : > { %v2823_v56 = vpop.f32.mrb[52].mxu1 }
0x19f3   : > { %v2824_v57 = vadd.f32 %v3267_v54, %v2823_v56  ;;  %v3638_v58 = vpop.f32.mrb[53].mxu1 }
0x19f4   : > { %v2826_v36 = vpop.f32.mrb[54].mxu1 }
0x19f5   : > { %3851 = vtanh.f32 %v2824_v57  ;;  %v3639_v59 = vpop.f32.mrb[55].mxu1 }
0x19ff   : > { %v3852_v60 = vpop.eup %3851 }
0x1a00   : > { %v2830_v61 = vpack.c.bf16 %v3852_v60, %v3852_v60 }
0x1a02   : > { %3645 = vmatmul.mubr.msk.bf16.vlgmr.msra.gmra.mrb[56].mxu1 %vm416_vm0, %v2830_v61 }
0x1a03   : > { %3652 = vmatprep.mubr.msk.bf16.mxu1 %vm3920_vm1, %v3919_v16  ;;  %3649 = vmatpush3.bf16.msra.mxu1 %v3789_v62 }
0x1a04   : > { %3650 = vmatprep.subr.bf16.mxu1 %v3919_v16 }
0x1a07   : > { %3651 = vmatpush3.bf16.msra.mxu1 %v3790_v63 }
0x1ad5   : > { %v2890_v1 = vpop.f32.mrb[56].mxu1 }
0x1ad6   : > { %v2891_v2 = vadd.f32 %v3275_v0, %v2890_v1  ;;  %v3646_v3 = vpop.f32.mrb[57].mxu1 }
0x1ad7   : > { %v2893_v4 = vpop.f32.mrb[58].mxu1 }
0x1ad8   : > { %v2897_v5 = vmul.f32 0.70710677, %v2891_v2  ;;  %v3647_v6 = vpop.f32.mrb[59].mxu1  ;;  %v2896_v16 = vmul.f32 0.5, %v2891_v2 }
0x1ada   : > { %3853 = verf.f32 %v2897_v5 }
0x1ae4   : > { %v3854_v7 = vpop.eup %3853 }
0x1ae5   : > { %v2899_v8 = vadd.f32 1.0, %v3854_v7 }
0x1ae7   : > { %v2900_v9 = vmul.f32 %v2899_v8, %v2896_v16 }
0x1ae9   : > { %v2901_v12 = vpack.c.bf16 %v2900_v9, %v2900_v9 }
0x1aeb   : > { %3653 = vmatmul.mubr.msk.bf16.vlgmr.msra.gmra.mrb[60].mxu1 %vm416_vm0, %v2901_v12 }
0x1bbe   : > { %v2961_v15 = vpop.f32.mrb[60].mxu1 }
0x1bbf   : > { %v2962_v19 = vadd.f32 %v3283_v14, %v2961_v15  ;;  %v3654_v20 = vpop.f32.mrb[61].mxu1 }
0x1bc0   : > { %v2964_v21 = vpop.f32.mrb[62].mxu1 }
0x1bc1   : > { %v3655_v22 = vpop.f32.mrb[63].mxu1  ;;  %2968 = vst.msk [vmem:[%s396_s25] sm:$0x3] %vm2967_vm5, %v2962_v19 }
0x1bc2   : > { %3868 = shalt.err (!%p3865_p3)
}
0x1bc3   : > { %s3869_s14 = scalar_lea.hbm %s4546_s13, 32  ;;  %s3873_s12 = scalar_lea.hbm %s4599_s11, 64 }
0x1bc4   : > { %p3870_p4 = scmp.ne.s32.totalorder %s4546_s13, %s3869_s14  ;;  %p3874_p9 = scmp.lt.u32.totalorder %s4546_s13, %s4599_s11 }
0x1bc5   : > { %p3875_p10 = scmp.lt.u32.totalorder %s3873_s12, %s3869_s14  ;;  %p3877_p12 = scmp.lt.u32.totalorder %s3869_s14, %s4546_s13 }
0x1bc6   : > { %p3871_p7 = pnand %p3870_p4, %p4020_p5 }
0x1bc7   : > { %p3876_p11 = por %p3875_p10, %p3874_p9 }
0x1bc8   : > { %p3872_p8 = pneg %p3871_p7 }
0x1bc9   : > { %p3878_p13 = por %p3877_p12, %p3876_p11 }
0x1bcb   : > { %p3879_p0 = pnand %p3878_p13, %p3872_p8 }
0x1bcd   : > { %3882 = shalt.err (!%p3879_p0)
}
0x1bce   : > { %3696 = dma.vmem_to_hbm [thread:$0]  (%p4020_p5), %s4548_s29, 32, %s4546_s13, %s2970_s21  }
0x1bcf PF: > { %p3702_p1 = scmp.ge.s32.totalorder %s3917_s20, 2  ;;  %s2995_s15 = sand.u32 1, %s3905_s17  }
0x1bd0   : > { %s2996_s30 = scalar_lea.sflag [#allocation3], %s2995_s15 }
0x1bd1   : > { %p3699_p2 = pnand %p3702_p1, %p4024_p6 }
0x1bd3   : > { %3900 = dma.done.wait (!%p3699_p2), %s2996_s30, 32  }
0x1bd4   : > { %3902 = vsyncadd (!%p3699_p2), %s2996_s30, 4294967264  ;;  %p21_p3 = scmp.ge.s32.totalorder %s4007_s23, 4   ;;  %s4604_s17 = smov %s3909_s18 }
0x1bd5   : > { %s4605_s18 = smov %s3913_s19  ;;  %s4606_s19 = smov %s4018_s26 }
0x1bd6   : > { %s4607_s20 = smov %s4007_s23  ;;  %23 = sbr.rel (!%p21_p3) target bundleno = 3 (0x3), region = 126 }
0x1bdd   :  { %3001 = vsyncpa [#allocation3], 1 }
0x1bde   :  { %3003 = vsyncpa [#allocation3 + $0x1], 1 }

</bundles_post_ra>
